<compile_context>
chip_gen: v6e
topology: v6e:2x2x1
jax: 0.10.0
libtpu: 0.0.40
codegen_flags: <defaults>
</compile_context>

<pallas_src>
import jax
import jax.numpy as jnp
from jax import lax
from jax.experimental import pallas as pl
from jax.experimental.pallas import tpu as pltpu

H = 10            # hidden width of SineNet2
CHUNK_ROWS = 8    # inner sub-chunk: (8, 128) = 1024 samples = one f32 vreg / slab

# Packed parameter layout (1-D f32[141] living in SMEM).
_W1_OFF = 0                 # w1[j]
_B1_OFF = _W1_OFF + H       # b1[j]
_W2_OFF = _B1_OFF + H       # w2[k, j] row-major (out, in): _W2_OFF + k*H + j
_B2_OFF = _W2_OFF + H * H   # b2[k]
_W3_OFF = _B2_OFF + H       # w3[k]
_B3_OFF = _W3_OFF + H       # b3
_NPARAMS = _B3_OFF + 1      # 141


def sinenet2_kernel(p_ref, x_ref, o_ref):
    """p_ref: SMEM f32[141]; x_ref / o_ref: VMEM (block_rows, 128) f32."""
    block_rows = x_ref.shape[0]
    n_chunks = block_rows // CHUNK_ROWS

    # Hoist all scalar reads out of the chunk loop (loop-invariant sregs).
    w1 = [p_ref[_W1_OFF + j] for j in range(H)]
    b1 = [p_ref[_B1_OFF + j] for j in range(H)]
    w2 = [[p_ref[_W2_OFF + k * H + j] for j in range(H)] for k in range(H)]
    b2 = [p_ref[_B2_OFF + k] for k in range(H)]
    w3 = [p_ref[_W3_OFF + k] for k in range(H)]
    b3 = p_ref[_B3_OFF]

    def chunk_body(c, carry):
        r0 = pl.multiple_of(c * CHUNK_ROWS, CHUNK_ROWS)
        x = x_ref[pl.ds(r0, CHUNK_ROWS), :]          # (8, 128): one vreg of samples

        # layer 1 + ReLU: ten per-unit slabs, pure scalar-splat VPU math
        h1 = [jnp.maximum(w1[j] * x + b1[j], 0.0) for j in range(H)]

        # layer 2 + ReLU: 100 scalar-splat FMAs on full vregs, zero XLU work
        h2 = []
        for k in range(H):
            acc = w2[k][0] * h1[0]
            for j in range(1, H):
                acc = acc + w2[k][j] * h1[j]
            h2.append(jnp.maximum(acc + b2[k], 0.0))

        # layer 3: scalar-splat multiply-adds across the ten slabs (no reduce)
        out = w3[0] * h2[0]
        for k in range(1, H):
            out = out + w3[k] * h2[k]
        out = out + b3

        o_ref[pl.ds(r0, CHUNK_ROWS), :] = out.astype(o_ref.dtype)
        return carry

    lax.fori_loop(0, n_chunks, chunk_body, 0, unroll=min(n_chunks, 4))


def _round_up(a, m):
    return (a + m - 1) // m * m


def pack_params(params):
    """Pack all weights/biases (PyTorch (out,in) layout) into one f32[141]."""
    return jnp.concatenate([
        params["w1"].reshape(-1), params["b1"].reshape(-1),
        params["w2"].reshape(-1), params["b2"].reshape(-1),
        params["w3"].reshape(-1), params["b3"].reshape(-1),
    ]).astype(jnp.float32)


def sinenet2_forward(x, params, *, max_block_rows=1024):
    """x: (B, 1) float32 (PyTorch layout). Returns (B, 1) float32."""
    B = x.shape[0]
    packed = pack_params(params)                                   # (141,) -> SMEM

    # Batch laid out over sublanes AND lanes: (rows, 128) f32.
    rows = _round_up(max(pl.cdiv(B, 128), CHUNK_ROWS), CHUNK_ROWS)

    max_block_rows = _round_up(min(max_block_rows, rows), CHUNK_ROWS)
    n_blocks = pl.cdiv(rows, max_block_rows)
    if n_blocks == 1 and rows >= 2 * CHUNK_ROWS:
        n_blocks = 2          # give both v7x TensorCores a block to work on
    block_rows = _round_up(pl.cdiv(rows, n_blocks), CHUNK_ROWS)
    rows_p = n_blocks * block_rows
    total = rows_p * 128

    x_flat = x.reshape(-1).astype(jnp.float32)
    if total != B:                                   # pad only when actually needed
        x_flat = jnp.pad(x_flat, (0, total - B))
    x2d = x_flat.reshape(rows_p, 128)

    out2d = pl.pallas_call(
        sinenet2_kernel,
        out_shape=jax.ShapeDtypeStruct((rows_p, 128), jnp.float32),
        grid_spec=pltpu.PrefetchScalarGridSpec(
            num_scalar_prefetch=0,
            grid=(n_blocks,),
            in_specs=[
                pl.BlockSpec(memory_space=pltpu.MemorySpace.SMEM),  # packed params
                pl.BlockSpec((block_rows, 128), lambda i: (i, 0)),  # x slab
            ],
            out_specs=pl.BlockSpec((block_rows, 128), lambda i: (i, 0)),
        ),
        compiler_params=pltpu.CompilerParams(
            dimension_semantics=("parallel",)),
    )(packed, x2d)

    out_flat = out2d.reshape(-1)
    if total != B:
        out_flat = out_flat[:B]
    return out_flat.reshape(B, 1)


def init_params(key):
    """PyTorch nn.Linear-style init, weights stored in (out_features, in_features)."""
    ks = jax.random.split(key, 6)

    def linear(kw, kb, fan_in, fan_out):
        bound = 1.0 / jnp.sqrt(float(fan_in))
        w = jax.random.uniform(kw, (fan_out, fan_in), jnp.float32, -bound, bound)
        b = jax.random.uniform(kb, (fan_out,), jnp.float32, -bound, bound)
        return w, b

    w1, b1 = linear(ks[0], ks[1], 1, H)
    w2, b2 = linear(ks[2], ks[3], H, H)
    w3, b3 = linear(ks[4], ks[5], H, 1)
    return {"w1": w1, "b1": b1, "w2": w2, "b2": b2, "w3": w3, "b3": b3}


def reference_forward(x, p):
    h1 = jnp.maximum(x @ p["w1"].T + p["b1"], 0.0)
    h2 = jnp.maximum(h1 @ p["w2"].T + p["b2"], 0.0)
    return h2 @ p["w3"].T + p["b3"]


if __name__ == "__main__":
    key = jax.random.PRNGKey(0)
    kx, kx2, kp = jax.random.split(key, 3)
    params = init_params(kp)

    # Small batch (single grid step, padded to one 8x128 slab).
    B = 64
    x = jax.random.uniform(kx, (B, 1), jnp.float32, -jnp.pi, jnp.pi)
    out = jax.block_until_ready(sinenet2_forward(x, params))
    ref = reference_forward(x, params)
    assert out.shape == (B, 1)
    assert jnp.allclose(out, ref, atol=1e-5, rtol=1e-5), "mismatch vs reference (B=64)"

    # Larger, non-multiple batch exercising the multi-block (2-TensorCore) path.
    B2 = 2050
    x2 = jax.random.uniform(kx2, (B2, 1), jnp.float32, -jnp.pi, jnp.pi)
    out2 = jax.block_until_ready(sinenet2_forward(x2, params))
    ref2 = reference_forward(x2, params)
    assert out2.shape == (B2, 1)
    assert jnp.allclose(out2, ref2, atol=1e-5, rtol=1e-5), "mismatch vs reference (B=2050)"

    print("KERNEL_OK")
</pallas_src>

<mosaic_0001>
module attributes {stable_mosaic.version = 11 : i64} {
  func.func @sinenet2_kernel(%arg0: i32, %arg1: memref<141xf32, #tpu.memory_space<smem>>, %arg2: memref<8x128xf32, #tpu.memory_space<vmem>>, %arg3: memref<8x128xf32, #tpu.memory_space<vmem>>) attributes {dimension_semantics = [#tpu.dimension_semantics<parallel>], iteration_bounds = array<i64: 1>, scalar_prefetch = 0 : i64, scratch_operands = 0 : i64, tpu.core_type = #tpu.core_type<tc>, window_params = [{transform_indices = @transform_0, window_bounds = array<i64: 141>}, {transform_indices = @transform_1, window_bounds = array<i64: 8, 128>}, {transform_indices = @transform_2, window_bounds = array<i64: 8, 128>}]} {
    %c0 = arith.constant 0 : index
    %0 = memref.load %arg1[%c0] : memref<141xf32, #tpu.memory_space<smem>>
    %c1 = arith.constant 1 : index
    %1 = memref.load %arg1[%c1] : memref<141xf32, #tpu.memory_space<smem>>
    %c2 = arith.constant 2 : index
    %2 = memref.load %arg1[%c2] : memref<141xf32, #tpu.memory_space<smem>>
    %c3 = arith.constant 3 : index
    %3 = memref.load %arg1[%c3] : memref<141xf32, #tpu.memory_space<smem>>
    %c4 = arith.constant 4 : index
    %4 = memref.load %arg1[%c4] : memref<141xf32, #tpu.memory_space<smem>>
    %c5 = arith.constant 5 : index
    %5 = memref.load %arg1[%c5] : memref<141xf32, #tpu.memory_space<smem>>
    %c6 = arith.constant 6 : index
    %6 = memref.load %arg1[%c6] : memref<141xf32, #tpu.memory_space<smem>>
    %c7 = arith.constant 7 : index
    %7 = memref.load %arg1[%c7] : memref<141xf32, #tpu.memory_space<smem>>
    %c8 = arith.constant 8 : index
    %8 = memref.load %arg1[%c8] : memref<141xf32, #tpu.memory_space<smem>>
    %c9 = arith.constant 9 : index
    %9 = memref.load %arg1[%c9] : memref<141xf32, #tpu.memory_space<smem>>
    %c10 = arith.constant 10 : index
    %10 = memref.load %arg1[%c10] : memref<141xf32, #tpu.memory_space<smem>>
    %c11 = arith.constant 11 : index
    %11 = memref.load %arg1[%c11] : memref<141xf32, #tpu.memory_space<smem>>
    %c12 = arith.constant 12 : index
    %12 = memref.load %arg1[%c12] : memref<141xf32, #tpu.memory_space<smem>>
    %c13 = arith.constant 13 : index
    %13 = memref.load %arg1[%c13] : memref<141xf32, #tpu.memory_space<smem>>
    %c14 = arith.constant 14 : index
    %14 = memref.load %arg1[%c14] : memref<141xf32, #tpu.memory_space<smem>>
    %c15 = arith.constant 15 : index
    %15 = memref.load %arg1[%c15] : memref<141xf32, #tpu.memory_space<smem>>
    %c16 = arith.constant 16 : index
    %16 = memref.load %arg1[%c16] : memref<141xf32, #tpu.memory_space<smem>>
    %c17 = arith.constant 17 : index
    %17 = memref.load %arg1[%c17] : memref<141xf32, #tpu.memory_space<smem>>
    %c18 = arith.constant 18 : index
    %18 = memref.load %arg1[%c18] : memref<141xf32, #tpu.memory_space<smem>>
    %c19 = arith.constant 19 : index
    %19 = memref.load %arg1[%c19] : memref<141xf32, #tpu.memory_space<smem>>
    %c20 = arith.constant 20 : index
    %20 = memref.load %arg1[%c20] : memref<141xf32, #tpu.memory_space<smem>>
    %c21 = arith.constant 21 : index
    %21 = memref.load %arg1[%c21] : memref<141xf32, #tpu.memory_space<smem>>
    %c22 = arith.constant 22 : index
    %22 = memref.load %arg1[%c22] : memref<141xf32, #tpu.memory_space<smem>>
    %c23 = arith.constant 23 : index
    %23 = memref.load %arg1[%c23] : memref<141xf32, #tpu.memory_space<smem>>
    %c24 = arith.constant 24 : index
    %24 = memref.load %arg1[%c24] : memref<141xf32, #tpu.memory_space<smem>>
    %c25 = arith.constant 25 : index
    %25 = memref.load %arg1[%c25] : memref<141xf32, #tpu.memory_space<smem>>
    %c26 = arith.constant 26 : index
    %26 = memref.load %arg1[%c26] : memref<141xf32, #tpu.memory_space<smem>>
    %c27 = arith.constant 27 : index
    %27 = memref.load %arg1[%c27] : memref<141xf32, #tpu.memory_space<smem>>
    %c28 = arith.constant 28 : index
    %28 = memref.load %arg1[%c28] : memref<141xf32, #tpu.memory_space<smem>>
    %c29 = arith.constant 29 : index
    %29 = memref.load %arg1[%c29] : memref<141xf32, #tpu.memory_space<smem>>
    %c30 = arith.constant 30 : index
    %30 = memref.load %arg1[%c30] : memref<141xf32, #tpu.memory_space<smem>>
    %c31 = arith.constant 31 : index
    %31 = memref.load %arg1[%c31] : memref<141xf32, #tpu.memory_space<smem>>
    %c32 = arith.constant 32 : index
    %32 = memref.load %arg1[%c32] : memref<141xf32, #tpu.memory_space<smem>>
    %c33 = arith.constant 33 : index
    %33 = memref.load %arg1[%c33] : memref<141xf32, #tpu.memory_space<smem>>
    %c34 = arith.constant 34 : index
    %34 = memref.load %arg1[%c34] : memref<141xf32, #tpu.memory_space<smem>>
    %c35 = arith.constant 35 : index
    %35 = memref.load %arg1[%c35] : memref<141xf32, #tpu.memory_space<smem>>
    %c36 = arith.constant 36 : index
    %36 = memref.load %arg1[%c36] : memref<141xf32, #tpu.memory_space<smem>>
    %c37 = arith.constant 37 : index
    %37 = memref.load %arg1[%c37] : memref<141xf32, #tpu.memory_space<smem>>
    %c38 = arith.constant 38 : index
    %38 = memref.load %arg1[%c38] : memref<141xf32, #tpu.memory_space<smem>>
    %c39 = arith.constant 39 : index
    %39 = memref.load %arg1[%c39] : memref<141xf32, #tpu.memory_space<smem>>
    %c40 = arith.constant 40 : index
    %40 = memref.load %arg1[%c40] : memref<141xf32, #tpu.memory_space<smem>>
    %c41 = arith.constant 41 : index
    %41 = memref.load %arg1[%c41] : memref<141xf32, #tpu.memory_space<smem>>
    %c42 = arith.constant 42 : index
    %42 = memref.load %arg1[%c42] : memref<141xf32, #tpu.memory_space<smem>>
    %c43 = arith.constant 43 : index
    %43 = memref.load %arg1[%c43] : memref<141xf32, #tpu.memory_space<smem>>
    %c44 = arith.constant 44 : index
    %44 = memref.load %arg1[%c44] : memref<141xf32, #tpu.memory_space<smem>>
    %c45 = arith.constant 45 : index
    %45 = memref.load %arg1[%c45] : memref<141xf32, #tpu.memory_space<smem>>
    %c46 = arith.constant 46 : index
    %46 = memref.load %arg1[%c46] : memref<141xf32, #tpu.memory_space<smem>>
    %c47 = arith.constant 47 : index
    %47 = memref.load %arg1[%c47] : memref<141xf32, #tpu.memory_space<smem>>
    %c48 = arith.constant 48 : index
    %48 = memref.load %arg1[%c48] : memref<141xf32, #tpu.memory_space<smem>>
    %c49 = arith.constant 49 : index
    %49 = memref.load %arg1[%c49] : memref<141xf32, #tpu.memory_space<smem>>
    %c50 = arith.constant 50 : index
    %50 = memref.load %arg1[%c50] : memref<141xf32, #tpu.memory_space<smem>>
    %c51 = arith.constant 51 : index
    %51 = memref.load %arg1[%c51] : memref<141xf32, #tpu.memory_space<smem>>
    %c52 = arith.constant 52 : index
    %52 = memref.load %arg1[%c52] : memref<141xf32, #tpu.memory_space<smem>>
    %c53 = arith.constant 53 : index
    %53 = memref.load %arg1[%c53] : memref<141xf32, #tpu.memory_space<smem>>
    %c54 = arith.constant 54 : index
    %54 = memref.load %arg1[%c54] : memref<141xf32, #tpu.memory_space<smem>>
    %c55 = arith.constant 55 : index
    %55 = memref.load %arg1[%c55] : memref<141xf32, #tpu.memory_space<smem>>
    %c56 = arith.constant 56 : index
    %56 = memref.load %arg1[%c56] : memref<141xf32, #tpu.memory_space<smem>>
    %c57 = arith.constant 57 : index
    %57 = memref.load %arg1[%c57] : memref<141xf32, #tpu.memory_space<smem>>
    %c58 = arith.constant 58 : index
    %58 = memref.load %arg1[%c58] : memref<141xf32, #tpu.memory_space<smem>>
    %c59 = arith.constant 59 : index
    %59 = memref.load %arg1[%c59] : memref<141xf32, #tpu.memory_space<smem>>
    %c60 = arith.constant 60 : index
    %60 = memref.load %arg1[%c60] : memref<141xf32, #tpu.memory_space<smem>>
    %c61 = arith.constant 61 : index
    %61 = memref.load %arg1[%c61] : memref<141xf32, #tpu.memory_space<smem>>
    %c62 = arith.constant 62 : index
    %62 = memref.load %arg1[%c62] : memref<141xf32, #tpu.memory_space<smem>>
    %c63 = arith.constant 63 : index
    %63 = memref.load %arg1[%c63] : memref<141xf32, #tpu.memory_space<smem>>
    %c64 = arith.constant 64 : index
    %64 = memref.load %arg1[%c64] : memref<141xf32, #tpu.memory_space<smem>>
    %c65 = arith.constant 65 : index
    %65 = memref.load %arg1[%c65] : memref<141xf32, #tpu.memory_space<smem>>
    %c66 = arith.constant 66 : index
    %66 = memref.load %arg1[%c66] : memref<141xf32, #tpu.memory_space<smem>>
    %c67 = arith.constant 67 : index
    %67 = memref.load %arg1[%c67] : memref<141xf32, #tpu.memory_space<smem>>
    %c68 = arith.constant 68 : index
    %68 = memref.load %arg1[%c68] : memref<141xf32, #tpu.memory_space<smem>>
    %c69 = arith.constant 69 : index
    %69 = memref.load %arg1[%c69] : memref<141xf32, #tpu.memory_space<smem>>
    %c70 = arith.constant 70 : index
    %70 = memref.load %arg1[%c70] : memref<141xf32, #tpu.memory_space<smem>>
    %c71 = arith.constant 71 : index
    %71 = memref.load %arg1[%c71] : memref<141xf32, #tpu.memory_space<smem>>
    %c72 = arith.constant 72 : index
    %72 = memref.load %arg1[%c72] : memref<141xf32, #tpu.memory_space<smem>>
    %c73 = arith.constant 73 : index
    %73 = memref.load %arg1[%c73] : memref<141xf32, #tpu.memory_space<smem>>
    %c74 = arith.constant 74 : index
    %74 = memref.load %arg1[%c74] : memref<141xf32, #tpu.memory_space<smem>>
    %c75 = arith.constant 75 : index
    %75 = memref.load %arg1[%c75] : memref<141xf32, #tpu.memory_space<smem>>
    %c76 = arith.constant 76 : index
    %76 = memref.load %arg1[%c76] : memref<141xf32, #tpu.memory_space<smem>>
    %c77 = arith.constant 77 : index
    %77 = memref.load %arg1[%c77] : memref<141xf32, #tpu.memory_space<smem>>
    %c78 = arith.constant 78 : index
    %78 = memref.load %arg1[%c78] : memref<141xf32, #tpu.memory_space<smem>>
    %c79 = arith.constant 79 : index
    %79 = memref.load %arg1[%c79] : memref<141xf32, #tpu.memory_space<smem>>
    %c80 = arith.constant 80 : index
    %80 = memref.load %arg1[%c80] : memref<141xf32, #tpu.memory_space<smem>>
    %c81 = arith.constant 81 : index
    %81 = memref.load %arg1[%c81] : memref<141xf32, #tpu.memory_space<smem>>
    %c82 = arith.constant 82 : index
    %82 = memref.load %arg1[%c82] : memref<141xf32, #tpu.memory_space<smem>>
    %c83 = arith.constant 83 : index
    %83 = memref.load %arg1[%c83] : memref<141xf32, #tpu.memory_space<smem>>
    %c84 = arith.constant 84 : index
    %84 = memref.load %arg1[%c84] : memref<141xf32, #tpu.memory_space<smem>>
    %c85 = arith.constant 85 : index
    %85 = memref.load %arg1[%c85] : memref<141xf32, #tpu.memory_space<smem>>
    %c86 = arith.constant 86 : index
    %86 = memref.load %arg1[%c86] : memref<141xf32, #tpu.memory_space<smem>>
    %c87 = arith.constant 87 : index
    %87 = memref.load %arg1[%c87] : memref<141xf32, #tpu.memory_space<smem>>
    %c88 = arith.constant 88 : index
    %88 = memref.load %arg1[%c88] : memref<141xf32, #tpu.memory_space<smem>>
    %c89 = arith.constant 89 : index
    %89 = memref.load %arg1[%c89] : memref<141xf32, #tpu.memory_space<smem>>
    %c90 = arith.constant 90 : index
    %90 = memref.load %arg1[%c90] : memref<141xf32, #tpu.memory_space<smem>>
    %c91 = arith.constant 91 : index
    %91 = memref.load %arg1[%c91] : memref<141xf32, #tpu.memory_space<smem>>
    %c92 = arith.constant 92 : index
    %92 = memref.load %arg1[%c92] : memref<141xf32, #tpu.memory_space<smem>>
    %c93 = arith.constant 93 : index
    %93 = memref.load %arg1[%c93] : memref<141xf32, #tpu.memory_space<smem>>
    %c94 = arith.constant 94 : index
    %94 = memref.load %arg1[%c94] : memref<141xf32, #tpu.memory_space<smem>>
    %c95 = arith.constant 95 : index
    %95 = memref.load %arg1[%c95] : memref<141xf32, #tpu.memory_space<smem>>
    %c96 = arith.constant 96 : index
    %96 = memref.load %arg1[%c96] : memref<141xf32, #tpu.memory_space<smem>>
    %c97 = arith.constant 97 : index
    %97 = memref.load %arg1[%c97] : memref<141xf32, #tpu.memory_space<smem>>
    %c98 = arith.constant 98 : index
    %98 = memref.load %arg1[%c98] : memref<141xf32, #tpu.memory_space<smem>>
    %c99 = arith.constant 99 : index
    %99 = memref.load %arg1[%c99] : memref<141xf32, #tpu.memory_space<smem>>
    %c100 = arith.constant 100 : index
    %100 = memref.load %arg1[%c100] : memref<141xf32, #tpu.memory_space<smem>>
    %c101 = arith.constant 101 : index
    %101 = memref.load %arg1[%c101] : memref<141xf32, #tpu.memory_space<smem>>
    %c102 = arith.constant 102 : index
    %102 = memref.load %arg1[%c102] : memref<141xf32, #tpu.memory_space<smem>>
    %c103 = arith.constant 103 : index
    %103 = memref.load %arg1[%c103] : memref<141xf32, #tpu.memory_space<smem>>
    %c104 = arith.constant 104 : index
    %104 = memref.load %arg1[%c104] : memref<141xf32, #tpu.memory_space<smem>>
    %c105 = arith.constant 105 : index
    %105 = memref.load %arg1[%c105] : memref<141xf32, #tpu.memory_space<smem>>
    %c106 = arith.constant 106 : index
    %106 = memref.load %arg1[%c106] : memref<141xf32, #tpu.memory_space<smem>>
    %c107 = arith.constant 107 : index
    %107 = memref.load %arg1[%c107] : memref<141xf32, #tpu.memory_space<smem>>
    %c108 = arith.constant 108 : index
    %108 = memref.load %arg1[%c108] : memref<141xf32, #tpu.memory_space<smem>>
    %c109 = arith.constant 109 : index
    %109 = memref.load %arg1[%c109] : memref<141xf32, #tpu.memory_space<smem>>
    %c110 = arith.constant 110 : index
    %110 = memref.load %arg1[%c110] : memref<141xf32, #tpu.memory_space<smem>>
    %c111 = arith.constant 111 : index
    %111 = memref.load %arg1[%c111] : memref<141xf32, #tpu.memory_space<smem>>
    %c112 = arith.constant 112 : index
    %112 = memref.load %arg1[%c112] : memref<141xf32, #tpu.memory_space<smem>>
    %c113 = arith.constant 113 : index
    %113 = memref.load %arg1[%c113] : memref<141xf32, #tpu.memory_space<smem>>
    %c114 = arith.constant 114 : index
    %114 = memref.load %arg1[%c114] : memref<141xf32, #tpu.memory_space<smem>>
    %c115 = arith.constant 115 : index
    %115 = memref.load %arg1[%c115] : memref<141xf32, #tpu.memory_space<smem>>
    %c116 = arith.constant 116 : index
    %116 = memref.load %arg1[%c116] : memref<141xf32, #tpu.memory_space<smem>>
    %c117 = arith.constant 117 : index
    %117 = memref.load %arg1[%c117] : memref<141xf32, #tpu.memory_space<smem>>
    %c118 = arith.constant 118 : index
    %118 = memref.load %arg1[%c118] : memref<141xf32, #tpu.memory_space<smem>>
    %c119 = arith.constant 119 : index
    %119 = memref.load %arg1[%c119] : memref<141xf32, #tpu.memory_space<smem>>
    %c120 = arith.constant 120 : index
    %120 = memref.load %arg1[%c120] : memref<141xf32, #tpu.memory_space<smem>>
    %c121 = arith.constant 121 : index
    %121 = memref.load %arg1[%c121] : memref<141xf32, #tpu.memory_space<smem>>
    %c122 = arith.constant 122 : index
    %122 = memref.load %arg1[%c122] : memref<141xf32, #tpu.memory_space<smem>>
    %c123 = arith.constant 123 : index
    %123 = memref.load %arg1[%c123] : memref<141xf32, #tpu.memory_space<smem>>
    %c124 = arith.constant 124 : index
    %124 = memref.load %arg1[%c124] : memref<141xf32, #tpu.memory_space<smem>>
    %c125 = arith.constant 125 : index
    %125 = memref.load %arg1[%c125] : memref<141xf32, #tpu.memory_space<smem>>
    %c126 = arith.constant 126 : index
    %126 = memref.load %arg1[%c126] : memref<141xf32, #tpu.memory_space<smem>>
    %c127 = arith.constant 127 : index
    %127 = memref.load %arg1[%c127] : memref<141xf32, #tpu.memory_space<smem>>
    %c128 = arith.constant 128 : index
    %128 = memref.load %arg1[%c128] : memref<141xf32, #tpu.memory_space<smem>>
    %c129 = arith.constant 129 : index
    %129 = memref.load %arg1[%c129] : memref<141xf32, #tpu.memory_space<smem>>
    %c130 = arith.constant 130 : index
    %130 = memref.load %arg1[%c130] : memref<141xf32, #tpu.memory_space<smem>>
    %c131 = arith.constant 131 : index
    %131 = memref.load %arg1[%c131] : memref<141xf32, #tpu.memory_space<smem>>
    %c132 = arith.constant 132 : index
    %132 = memref.load %arg1[%c132] : memref<141xf32, #tpu.memory_space<smem>>
    %c133 = arith.constant 133 : index
    %133 = memref.load %arg1[%c133] : memref<141xf32, #tpu.memory_space<smem>>
    %c134 = arith.constant 134 : index
    %134 = memref.load %arg1[%c134] : memref<141xf32, #tpu.memory_space<smem>>
    %c135 = arith.constant 135 : index
    %135 = memref.load %arg1[%c135] : memref<141xf32, #tpu.memory_space<smem>>
    %c136 = arith.constant 136 : index
    %136 = memref.load %arg1[%c136] : memref<141xf32, #tpu.memory_space<smem>>
    %c137 = arith.constant 137 : index
    %137 = memref.load %arg1[%c137] : memref<141xf32, #tpu.memory_space<smem>>
    %c138 = arith.constant 138 : index
    %138 = memref.load %arg1[%c138] : memref<141xf32, #tpu.memory_space<smem>>
    %c139 = arith.constant 139 : index
    %139 = memref.load %arg1[%c139] : memref<141xf32, #tpu.memory_space<smem>>
    %c140 = arith.constant 140 : index
    %140 = memref.load %arg1[%c140] : memref<141xf32, #tpu.memory_space<smem>>
    %c0_i32 = arith.constant 0 : i32
    %c8_i32 = arith.constant 8 : i32
    %141 = arith.muli %c0_i32, %c8_i32 : i32
    %142 = tpu.assume_multiple %141, 8 : i32
    %143 = arith.index_cast %142 : i32 to index
    %c0_0 = arith.constant 0 : index
    %144 = vector.load %arg2[%143, %c0_0] : memref<8x128xf32, #tpu.memory_space<vmem>>, vector<8x128xf32>
    %145 = vector.broadcast %0 : f32 to vector<8x128xf32>
    %146 = arith.mulf %145, %144 : vector<8x128xf32>
    %147 = vector.broadcast %10 : f32 to vector<8x128xf32>
    %148 = arith.addf %146, %147 : vector<8x128xf32>
    %cst = arith.constant 0.000000e+00 : f32
    %149 = vector.broadcast %cst : f32 to vector<8x128xf32>
    %150 = arith.maximumf %148, %149 : vector<8x128xf32>
    %151 = vector.broadcast %1 : f32 to vector<8x128xf32>
    %152 = arith.mulf %151, %144 : vector<8x128xf32>
    %153 = vector.broadcast %11 : f32 to vector<8x128xf32>
    %154 = arith.addf %152, %153 : vector<8x128xf32>
    %cst_1 = arith.constant 0.000000e+00 : f32
    %155 = vector.broadcast %cst_1 : f32 to vector<8x128xf32>
    %156 = arith.maximumf %154, %155 : vector<8x128xf32>
    %157 = vector.broadcast %2 : f32 to vector<8x128xf32>
    %158 = arith.mulf %157, %144 : vector<8x128xf32>
    %159 = vector.broadcast %12 : f32 to vector<8x128xf32>
    %160 = arith.addf %158, %159 : vector<8x128xf32>
    %cst_2 = arith.constant 0.000000e+00 : f32
    %161 = vector.broadcast %cst_2 : f32 to vector<8x128xf32>
    %162 = arith.maximumf %160, %161 : vector<8x128xf32>
    %163 = vector.broadcast %3 : f32 to vector<8x128xf32>
    %164 = arith.mulf %163, %144 : vector<8x128xf32>
    %165 = vector.broadcast %13 : f32 to vector<8x128xf32>
    %166 = arith.addf %164, %165 : vector<8x128xf32>
    %cst_3 = arith.constant 0.000000e+00 : f32
    %167 = vector.broadcast %cst_3 : f32 to vector<8x128xf32>
    %168 = arith.maximumf %166, %167 : vector<8x128xf32>
    %169 = vector.broadcast %4 : f32 to vector<8x128xf32>
    %170 = arith.mulf %169, %144 : vector<8x128xf32>
    %171 = vector.broadcast %14 : f32 to vector<8x128xf32>
    %172 = arith.addf %170, %171 : vector<8x128xf32>
    %cst_4 = arith.constant 0.000000e+00 : f32
    %173 = vector.broadcast %cst_4 : f32 to vector<8x128xf32>
    %174 = arith.maximumf %172, %173 : vector<8x128xf32>
    %175 = vector.broadcast %5 : f32 to vector<8x128xf32>
    %176 = arith.mulf %175, %144 : vector<8x128xf32>
    %177 = vector.broadcast %15 : f32 to vector<8x128xf32>
    %178 = arith.addf %176, %177 : vector<8x128xf32>
    %cst_5 = arith.constant 0.000000e+00 : f32
    %179 = vector.broadcast %cst_5 : f32 to vector<8x128xf32>
    %180 = arith.maximumf %178, %179 : vector<8x128xf32>
    %181 = vector.broadcast %6 : f32 to vector<8x128xf32>
    %182 = arith.mulf %181, %144 : vector<8x128xf32>
    %183 = vector.broadcast %16 : f32 to vector<8x128xf32>
    %184 = arith.addf %182, %183 : vector<8x128xf32>
    %cst_6 = arith.constant 0.000000e+00 : f32
    %185 = vector.broadcast %cst_6 : f32 to vector<8x128xf32>
    %186 = arith.maximumf %184, %185 : vector<8x128xf32>
    %187 = vector.broadcast %7 : f32 to vector<8x128xf32>
    %188 = arith.mulf %187, %144 : vector<8x128xf32>
    %189 = vector.broadcast %17 : f32 to vector<8x128xf32>
    %190 = arith.addf %188, %189 : vector<8x128xf32>
    %cst_7 = arith.constant 0.000000e+00 : f32
    %191 = vector.broadcast %cst_7 : f32 to vector<8x128xf32>
    %192 = arith.maximumf %190, %191 : vector<8x128xf32>
    %193 = vector.broadcast %8 : f32 to vector<8x128xf32>
    %194 = arith.mulf %193, %144 : vector<8x128xf32>
    %195 = vector.broadcast %18 : f32 to vector<8x128xf32>
    %196 = arith.addf %194, %195 : vector<8x128xf32>
    %cst_8 = arith.constant 0.000000e+00 : f32
    %197 = vector.broadcast %cst_8 : f32 to vector<8x128xf32>
    %198 = arith.maximumf %196, %197 : vector<8x128xf32>
    %199 = vector.broadcast %9 : f32 to vector<8x128xf32>
    %200 = arith.mulf %199, %144 : vector<8x128xf32>
    %201 = vector.broadcast %19 : f32 to vector<8x128xf32>
    %202 = arith.addf %200, %201 : vector<8x128xf32>
    %cst_9 = arith.constant 0.000000e+00 : f32
    %203 = vector.broadcast %cst_9 : f32 to vector<8x128xf32>
    %204 = arith.maximumf %202, %203 : vector<8x128xf32>
    %205 = vector.broadcast %20 : f32 to vector<8x128xf32>
    %206 = arith.mulf %205, %150 : vector<8x128xf32>
    %207 = vector.broadcast %21 : f32 to vector<8x128xf32>
    %208 = arith.mulf %207, %156 : vector<8x128xf32>
    %209 = arith.addf %206, %208 : vector<8x128xf32>
    %210 = vector.broadcast %22 : f32 to vector<8x128xf32>
    %211 = arith.mulf %210, %162 : vector<8x128xf32>
    %212 = arith.addf %209, %211 : vector<8x128xf32>
    %213 = vector.broadcast %23 : f32 to vector<8x128xf32>
    %214 = arith.mulf %213, %168 : vector<8x128xf32>
    %215 = arith.addf %212, %214 : vector<8x128xf32>
    %216 = vector.broadcast %24 : f32 to vector<8x128xf32>
    %217 = arith.mulf %216, %174 : vector<8x128xf32>
    %218 = arith.addf %215, %217 : vector<8x128xf32>
    %219 = vector.broadcast %25 : f32 to vector<8x128xf32>
    %220 = arith.mulf %219, %180 : vector<8x128xf32>
    %221 = arith.addf %218, %220 : vector<8x128xf32>
    %222 = vector.broadcast %26 : f32 to vector<8x128xf32>
    %223 = arith.mulf %222, %186 : vector<8x128xf32>
    %224 = arith.addf %221, %223 : vector<8x128xf32>
    %225 = vector.broadcast %27 : f32 to vector<8x128xf32>
    %226 = arith.mulf %225, %192 : vector<8x128xf32>
    %227 = arith.addf %224, %226 : vector<8x128xf32>
    %228 = vector.broadcast %28 : f32 to vector<8x128xf32>
    %229 = arith.mulf %228, %198 : vector<8x128xf32>
    %230 = arith.addf %227, %229 : vector<8x128xf32>
    %231 = vector.broadcast %29 : f32 to vector<8x128xf32>
    %232 = arith.mulf %231, %204 : vector<8x128xf32>
    %233 = arith.addf %230, %232 : vector<8x128xf32>
    %234 = vector.broadcast %120 : f32 to vector<8x128xf32>
    %235 = arith.addf %233, %234 : vector<8x128xf32>
    %cst_10 = arith.constant 0.000000e+00 : f32
    %236 = vector.broadcast %cst_10 : f32 to vector<8x128xf32>
    %237 = arith.maximumf %235, %236 : vector<8x128xf32>
    %238 = vector.broadcast %30 : f32 to vector<8x128xf32>
    %239 = arith.mulf %238, %150 : vector<8x128xf32>
    %240 = vector.broadcast %31 : f32 to vector<8x128xf32>
    %241 = arith.mulf %240, %156 : vector<8x128xf32>
    %242 = arith.addf %239, %241 : vector<8x128xf32>
    %243 = vector.broadcast %32 : f32 to vector<8x128xf32>
    %244 = arith.mulf %243, %162 : vector<8x128xf32>
    %245 = arith.addf %242, %244 : vector<8x128xf32>
    %246 = vector.broadcast %33 : f32 to vector<8x128xf32>
    %247 = arith.mulf %246, %168 : vector<8x128xf32>
    %248 = arith.addf %245, %247 : vector<8x128xf32>
    %249 = vector.broadcast %34 : f32 to vector<8x128xf32>
    %250 = arith.mulf %249, %174 : vector<8x128xf32>
    %251 = arith.addf %248, %250 : vector<8x128xf32>
    %252 = vector.broadcast %35 : f32 to vector<8x128xf32>
    %253 = arith.mulf %252, %180 : vector<8x128xf32>
    %254 = arith.addf %251, %253 : vector<8x128xf32>
    %255 = vector.broadcast %36 : f32 to vector<8x128xf32>
    %256 = arith.mulf %255, %186 : vector<8x128xf32>
    %257 = arith.addf %254, %256 : vector<8x128xf32>
    %258 = vector.broadcast %37 : f32 to vector<8x128xf32>
    %259 = arith.mulf %258, %192 : vector<8x128xf32>
    %260 = arith.addf %257, %259 : vector<8x128xf32>
    %261 = vector.broadcast %38 : f32 to vector<8x128xf32>
    %262 = arith.mulf %261, %198 : vector<8x128xf32>
    %263 = arith.addf %260, %262 : vector<8x128xf32>
    %264 = vector.broadcast %39 : f32 to vector<8x128xf32>
    %265 = arith.mulf %264, %204 : vector<8x128xf32>
    %266 = arith.addf %263, %265 : vector<8x128xf32>
    %267 = vector.broadcast %121 : f32 to vector<8x128xf32>
    %268 = arith.addf %266, %267 : vector<8x128xf32>
    %cst_11 = arith.constant 0.000000e+00 : f32
    %269 = vector.broadcast %cst_11 : f32 to vector<8x128xf32>
    %270 = arith.maximumf %268, %269 : vector<8x128xf32>
    %271 = vector.broadcast %40 : f32 to vector<8x128xf32>
    %272 = arith.mulf %271, %150 : vector<8x128xf32>
    %273 = vector.broadcast %41 : f32 to vector<8x128xf32>
    %274 = arith.mulf %273, %156 : vector<8x128xf32>
    %275 = arith.addf %272, %274 : vector<8x128xf32>
    %276 = vector.broadcast %42 : f32 to vector<8x128xf32>
    %277 = arith.mulf %276, %162 : vector<8x128xf32>
    %278 = arith.addf %275, %277 : vector<8x128xf32>
    %279 = vector.broadcast %43 : f32 to vector<8x128xf32>
    %280 = arith.mulf %279, %168 : vector<8x128xf32>
    %281 = arith.addf %278, %280 : vector<8x128xf32>
    %282 = vector.broadcast %44 : f32 to vector<8x128xf32>
    %283 = arith.mulf %282, %174 : vector<8x128xf32>
    %284 = arith.addf %281, %283 : vector<8x128xf32>
    %285 = vector.broadcast %45 : f32 to vector<8x128xf32>
    %286 = arith.mulf %285, %180 : vector<8x128xf32>
    %287 = arith.addf %284, %286 : vector<8x128xf32>
    %288 = vector.broadcast %46 : f32 to vector<8x128xf32>
    %289 = arith.mulf %288, %186 : vector<8x128xf32>
    %290 = arith.addf %287, %289 : vector<8x128xf32>
    %291 = vector.broadcast %47 : f32 to vector<8x128xf32>
    %292 = arith.mulf %291, %192 : vector<8x128xf32>
    %293 = arith.addf %290, %292 : vector<8x128xf32>
    %294 = vector.broadcast %48 : f32 to vector<8x128xf32>
    %295 = arith.mulf %294, %198 : vector<8x128xf32>
    %296 = arith.addf %293, %295 : vector<8x128xf32>
    %297 = vector.broadcast %49 : f32 to vector<8x128xf32>
    %298 = arith.mulf %297, %204 : vector<8x128xf32>
    %299 = arith.addf %296, %298 : vector<8x128xf32>
    %300 = vector.broadcast %122 : f32 to vector<8x128xf32>
    %301 = arith.addf %299, %300 : vector<8x128xf32>
    %cst_12 = arith.constant 0.000000e+00 : f32
    %302 = vector.broadcast %cst_12 : f32 to vector<8x128xf32>
    %303 = arith.maximumf %301, %302 : vector<8x128xf32>
    %304 = vector.broadcast %50 : f32 to vector<8x128xf32>
    %305 = arith.mulf %304, %150 : vector<8x128xf32>
    %306 = vector.broadcast %51 : f32 to vector<8x128xf32>
    %307 = arith.mulf %306, %156 : vector<8x128xf32>
    %308 = arith.addf %305, %307 : vector<8x128xf32>
    %309 = vector.broadcast %52 : f32 to vector<8x128xf32>
    %310 = arith.mulf %309, %162 : vector<8x128xf32>
    %311 = arith.addf %308, %310 : vector<8x128xf32>
    %312 = vector.broadcast %53 : f32 to vector<8x128xf32>
    %313 = arith.mulf %312, %168 : vector<8x128xf32>
    %314 = arith.addf %311, %313 : vector<8x128xf32>
    %315 = vector.broadcast %54 : f32 to vector<8x128xf32>
    %316 = arith.mulf %315, %174 : vector<8x128xf32>
    %317 = arith.addf %314, %316 : vector<8x128xf32>
    %318 = vector.broadcast %55 : f32 to vector<8x128xf32>
    %319 = arith.mulf %318, %180 : vector<8x128xf32>
    %320 = arith.addf %317, %319 : vector<8x128xf32>
    %321 = vector.broadcast %56 : f32 to vector<8x128xf32>
    %322 = arith.mulf %321, %186 : vector<8x128xf32>
    %323 = arith.addf %320, %322 : vector<8x128xf32>
    %324 = vector.broadcast %57 : f32 to vector<8x128xf32>
    %325 = arith.mulf %324, %192 : vector<8x128xf32>
    %326 = arith.addf %323, %325 : vector<8x128xf32>
    %327 = vector.broadcast %58 : f32 to vector<8x128xf32>
    %328 = arith.mulf %327, %198 : vector<8x128xf32>
    %329 = arith.addf %326, %328 : vector<8x128xf32>
    %330 = vector.broadcast %59 : f32 to vector<8x128xf32>
    %331 = arith.mulf %330, %204 : vector<8x128xf32>
    %332 = arith.addf %329, %331 : vector<8x128xf32>
    %333 = vector.broadcast %123 : f32 to vector<8x128xf32>
    %334 = arith.addf %332, %333 : vector<8x128xf32>
    %cst_13 = arith.constant 0.000000e+00 : f32
    %335 = vector.broadcast %cst_13 : f32 to vector<8x128xf32>
    %336 = arith.maximumf %334, %335 : vector<8x128xf32>
    %337 = vector.broadcast %60 : f32 to vector<8x128xf32>
    %338 = arith.mulf %337, %150 : vector<8x128xf32>
    %339 = vector.broadcast %61 : f32 to vector<8x128xf32>
    %340 = arith.mulf %339, %156 : vector<8x128xf32>
    %341 = arith.addf %338, %340 : vector<8x128xf32>
    %342 = vector.broadcast %62 : f32 to vector<8x128xf32>
    %343 = arith.mulf %342, %162 : vector<8x128xf32>
    %344 = arith.addf %341, %343 : vector<8x128xf32>
    %345 = vector.broadcast %63 : f32 to vector<8x128xf32>
    %346 = arith.mulf %345, %168 : vector<8x128xf32>
    %347 = arith.addf %344, %346 : vector<8x128xf32>
    %348 = vector.broadcast %64 : f32 to vector<8x128xf32>
    %349 = arith.mulf %348, %174 : vector<8x128xf32>
    %350 = arith.addf %347, %349 : vector<8x128xf32>
    %351 = vector.broadcast %65 : f32 to vector<8x128xf32>
    %352 = arith.mulf %351, %180 : vector<8x128xf32>
    %353 = arith.addf %350, %352 : vector<8x128xf32>
    %354 = vector.broadcast %66 : f32 to vector<8x128xf32>
    %355 = arith.mulf %354, %186 : vector<8x128xf32>
    %356 = arith.addf %353, %355 : vector<8x128xf32>
    %357 = vector.broadcast %67 : f32 to vector<8x128xf32>
    %358 = arith.mulf %357, %192 : vector<8x128xf32>
    %359 = arith.addf %356, %358 : vector<8x128xf32>
    %360 = vector.broadcast %68 : f32 to vector<8x128xf32>
    %361 = arith.mulf %360, %198 : vector<8x128xf32>
    %362 = arith.addf %359, %361 : vector<8x128xf32>
    %363 = vector.broadcast %69 : f32 to vector<8x128xf32>
    %364 = arith.mulf %363, %204 : vector<8x128xf32>
    %365 = arith.addf %362, %364 : vector<8x128xf32>
    %366 = vector.broadcast %124 : f32 to vector<8x128xf32>
    %367 = arith.addf %365, %366 : vector<8x128xf32>
    %cst_14 = arith.constant 0.000000e+00 : f32
    %368 = vector.broadcast %cst_14 : f32 to vector<8x128xf32>
    %369 = arith.maximumf %367, %368 : vector<8x128xf32>
    %370 = vector.broadcast %70 : f32 to vector<8x128xf32>
    %371 = arith.mulf %370, %150 : vector<8x128xf32>
    %372 = vector.broadcast %71 : f32 to vector<8x128xf32>
    %373 = arith.mulf %372, %156 : vector<8x128xf32>
    %374 = arith.addf %371, %373 : vector<8x128xf32>
    %375 = vector.broadcast %72 : f32 to vector<8x128xf32>
    %376 = arith.mulf %375, %162 : vector<8x128xf32>
    %377 = arith.addf %374, %376 : vector<8x128xf32>
    %378 = vector.broadcast %73 : f32 to vector<8x128xf32>
    %379 = arith.mulf %378, %168 : vector<8x128xf32>
    %380 = arith.addf %377, %379 : vector<8x128xf32>
    %381 = vector.broadcast %74 : f32 to vector<8x128xf32>
    %382 = arith.mulf %381, %174 : vector<8x128xf32>
    %383 = arith.addf %380, %382 : vector<8x128xf32>
    %384 = vector.broadcast %75 : f32 to vector<8x128xf32>
    %385 = arith.mulf %384, %180 : vector<8x128xf32>
    %386 = arith.addf %383, %385 : vector<8x128xf32>
    %387 = vector.broadcast %76 : f32 to vector<8x128xf32>
    %388 = arith.mulf %387, %186 : vector<8x128xf32>
    %389 = arith.addf %386, %388 : vector<8x128xf32>
    %390 = vector.broadcast %77 : f32 to vector<8x128xf32>
    %391 = arith.mulf %390, %192 : vector<8x128xf32>
    %392 = arith.addf %389, %391 : vector<8x128xf32>
    %393 = vector.broadcast %78 : f32 to vector<8x128xf32>
    %394 = arith.mulf %393, %198 : vector<8x128xf32>
    %395 = arith.addf %392, %394 : vector<8x128xf32>
    %396 = vector.broadcast %79 : f32 to vector<8x128xf32>
    %397 = arith.mulf %396, %204 : vector<8x128xf32>
    %398 = arith.addf %395, %397 : vector<8x128xf32>
    %399 = vector.broadcast %125 : f32 to vector<8x128xf32>
    %400 = arith.addf %398, %399 : vector<8x128xf32>
    %cst_15 = arith.constant 0.000000e+00 : f32
    %401 = vector.broadcast %cst_15 : f32 to vector<8x128xf32>
    %402 = arith.maximumf %400, %401 : vector<8x128xf32>
    %403 = vector.broadcast %80 : f32 to vector<8x128xf32>
    %404 = arith.mulf %403, %150 : vector<8x128xf32>
    %405 = vector.broadcast %81 : f32 to vector<8x128xf32>
    %406 = arith.mulf %405, %156 : vector<8x128xf32>
    %407 = arith.addf %404, %406 : vector<8x128xf32>
    %408 = vector.broadcast %82 : f32 to vector<8x128xf32>
    %409 = arith.mulf %408, %162 : vector<8x128xf32>
    %410 = arith.addf %407, %409 : vector<8x128xf32>
    %411 = vector.broadcast %83 : f32 to vector<8x128xf32>
    %412 = arith.mulf %411, %168 : vector<8x128xf32>
    %413 = arith.addf %410, %412 : vector<8x128xf32>
    %414 = vector.broadcast %84 : f32 to vector<8x128xf32>
    %415 = arith.mulf %414, %174 : vector<8x128xf32>
    %416 = arith.addf %413, %415 : vector<8x128xf32>
    %417 = vector.broadcast %85 : f32 to vector<8x128xf32>
    %418 = arith.mulf %417, %180 : vector<8x128xf32>
    %419 = arith.addf %416, %418 : vector<8x128xf32>
    %420 = vector.broadcast %86 : f32 to vector<8x128xf32>
    %421 = arith.mulf %420, %186 : vector<8x128xf32>
    %422 = arith.addf %419, %421 : vector<8x128xf32>
    %423 = vector.broadcast %87 : f32 to vector<8x128xf32>
    %424 = arith.mulf %423, %192 : vector<8x128xf32>
    %425 = arith.addf %422, %424 : vector<8x128xf32>
    %426 = vector.broadcast %88 : f32 to vector<8x128xf32>
    %427 = arith.mulf %426, %198 : vector<8x128xf32>
    %428 = arith.addf %425, %427 : vector<8x128xf32>
    %429 = vector.broadcast %89 : f32 to vector<8x128xf32>
    %430 = arith.mulf %429, %204 : vector<8x128xf32>
    %431 = arith.addf %428, %430 : vector<8x128xf32>
    %432 = vector.broadcast %126 : f32 to vector<8x128xf32>
    %433 = arith.addf %431, %432 : vector<8x128xf32>
    %cst_16 = arith.constant 0.000000e+00 : f32
    %434 = vector.broadcast %cst_16 : f32 to vector<8x128xf32>
    %435 = arith.maximumf %433, %434 : vector<8x128xf32>
    %436 = vector.broadcast %90 : f32 to vector<8x128xf32>
    %437 = arith.mulf %436, %150 : vector<8x128xf32>
    %438 = vector.broadcast %91 : f32 to vector<8x128xf32>
    %439 = arith.mulf %438, %156 : vector<8x128xf32>
    %440 = arith.addf %437, %439 : vector<8x128xf32>
    %441 = vector.broadcast %92 : f32 to vector<8x128xf32>
    %442 = arith.mulf %441, %162 : vector<8x128xf32>
    %443 = arith.addf %440, %442 : vector<8x128xf32>
    %444 = vector.broadcast %93 : f32 to vector<8x128xf32>
    %445 = arith.mulf %444, %168 : vector<8x128xf32>
    %446 = arith.addf %443, %445 : vector<8x128xf32>
    %447 = vector.broadcast %94 : f32 to vector<8x128xf32>
    %448 = arith.mulf %447, %174 : vector<8x128xf32>
    %449 = arith.addf %446, %448 : vector<8x128xf32>
    %450 = vector.broadcast %95 : f32 to vector<8x128xf32>
    %451 = arith.mulf %450, %180 : vector<8x128xf32>
    %452 = arith.addf %449, %451 : vector<8x128xf32>
    %453 = vector.broadcast %96 : f32 to vector<8x128xf32>
    %454 = arith.mulf %453, %186 : vector<8x128xf32>
    %455 = arith.addf %452, %454 : vector<8x128xf32>
    %456 = vector.broadcast %97 : f32 to vector<8x128xf32>
    %457 = arith.mulf %456, %192 : vector<8x128xf32>
    %458 = arith.addf %455, %457 : vector<8x128xf32>
    %459 = vector.broadcast %98 : f32 to vector<8x128xf32>
    %460 = arith.mulf %459, %198 : vector<8x128xf32>
    %461 = arith.addf %458, %460 : vector<8x128xf32>
    %462 = vector.broadcast %99 : f32 to vector<8x128xf32>
    %463 = arith.mulf %462, %204 : vector<8x128xf32>
    %464 = arith.addf %461, %463 : vector<8x128xf32>
    %465 = vector.broadcast %127 : f32 to vector<8x128xf32>
    %466 = arith.addf %464, %465 : vector<8x128xf32>
    %cst_17 = arith.constant 0.000000e+00 : f32
    %467 = vector.broadcast %cst_17 : f32 to vector<8x128xf32>
    %468 = arith.maximumf %466, %467 : vector<8x128xf32>
    %469 = vector.broadcast %100 : f32 to vector<8x128xf32>
    %470 = arith.mulf %469, %150 : vector<8x128xf32>
    %471 = vector.broadcast %101 : f32 to vector<8x128xf32>
    %472 = arith.mulf %471, %156 : vector<8x128xf32>
    %473 = arith.addf %470, %472 : vector<8x128xf32>
    %474 = vector.broadcast %102 : f32 to vector<8x128xf32>
    %475 = arith.mulf %474, %162 : vector<8x128xf32>
    %476 = arith.addf %473, %475 : vector<8x128xf32>
    %477 = vector.broadcast %103 : f32 to vector<8x128xf32>
    %478 = arith.mulf %477, %168 : vector<8x128xf32>
    %479 = arith.addf %476, %478 : vector<8x128xf32>
    %480 = vector.broadcast %104 : f32 to vector<8x128xf32>
    %481 = arith.mulf %480, %174 : vector<8x128xf32>
    %482 = arith.addf %479, %481 : vector<8x128xf32>
    %483 = vector.broadcast %105 : f32 to vector<8x128xf32>
    %484 = arith.mulf %483, %180 : vector<8x128xf32>
    %485 = arith.addf %482, %484 : vector<8x128xf32>
    %486 = vector.broadcast %106 : f32 to vector<8x128xf32>
    %487 = arith.mulf %486, %186 : vector<8x128xf32>
    %488 = arith.addf %485, %487 : vector<8x128xf32>
    %489 = vector.broadcast %107 : f32 to vector<8x128xf32>
    %490 = arith.mulf %489, %192 : vector<8x128xf32>
    %491 = arith.addf %488, %490 : vector<8x128xf32>
    %492 = vector.broadcast %108 : f32 to vector<8x128xf32>
    %493 = arith.mulf %492, %198 : vector<8x128xf32>
    %494 = arith.addf %491, %493 : vector<8x128xf32>
    %495 = vector.broadcast %109 : f32 to vector<8x128xf32>
    %496 = arith.mulf %495, %204 : vector<8x128xf32>
    %497 = arith.addf %494, %496 : vector<8x128xf32>
    %498 = vector.broadcast %128 : f32 to vector<8x128xf32>
    %499 = arith.addf %497, %498 : vector<8x128xf32>
    %cst_18 = arith.constant 0.000000e+00 : f32
    %500 = vector.broadcast %cst_18 : f32 to vector<8x128xf32>
    %501 = arith.maximumf %499, %500 : vector<8x128xf32>
    %502 = vector.broadcast %110 : f32 to vector<8x128xf32>
    %503 = arith.mulf %502, %150 : vector<8x128xf32>
    %504 = vector.broadcast %111 : f32 to vector<8x128xf32>
    %505 = arith.mulf %504, %156 : vector<8x128xf32>
    %506 = arith.addf %503, %505 : vector<8x128xf32>
    %507 = vector.broadcast %112 : f32 to vector<8x128xf32>
    %508 = arith.mulf %507, %162 : vector<8x128xf32>
    %509 = arith.addf %506, %508 : vector<8x128xf32>
    %510 = vector.broadcast %113 : f32 to vector<8x128xf32>
    %511 = arith.mulf %510, %168 : vector<8x128xf32>
    %512 = arith.addf %509, %511 : vector<8x128xf32>
    %513 = vector.broadcast %114 : f32 to vector<8x128xf32>
    %514 = arith.mulf %513, %174 : vector<8x128xf32>
    %515 = arith.addf %512, %514 : vector<8x128xf32>
    %516 = vector.broadcast %115 : f32 to vector<8x128xf32>
    %517 = arith.mulf %516, %180 : vector<8x128xf32>
    %518 = arith.addf %515, %517 : vector<8x128xf32>
    %519 = vector.broadcast %116 : f32 to vector<8x128xf32>
    %520 = arith.mulf %519, %186 : vector<8x128xf32>
    %521 = arith.addf %518, %520 : vector<8x128xf32>
    %522 = vector.broadcast %117 : f32 to vector<8x128xf32>
    %523 = arith.mulf %522, %192 : vector<8x128xf32>
    %524 = arith.addf %521, %523 : vector<8x128xf32>
    %525 = vector.broadcast %118 : f32 to vector<8x128xf32>
    %526 = arith.mulf %525, %198 : vector<8x128xf32>
    %527 = arith.addf %524, %526 : vector<8x128xf32>
    %528 = vector.broadcast %119 : f32 to vector<8x128xf32>
    %529 = arith.mulf %528, %204 : vector<8x128xf32>
    %530 = arith.addf %527, %529 : vector<8x128xf32>
    %531 = vector.broadcast %129 : f32 to vector<8x128xf32>
    %532 = arith.addf %530, %531 : vector<8x128xf32>
    %cst_19 = arith.constant 0.000000e+00 : f32
    %533 = vector.broadcast %cst_19 : f32 to vector<8x128xf32>
    %534 = arith.maximumf %532, %533 : vector<8x128xf32>
    %535 = vector.broadcast %130 : f32 to vector<8x128xf32>
    %536 = arith.mulf %535, %237 : vector<8x128xf32>
    %537 = vector.broadcast %131 : f32 to vector<8x128xf32>
    %538 = arith.mulf %537, %270 : vector<8x128xf32>
    %539 = arith.addf %536, %538 : vector<8x128xf32>
    %540 = vector.broadcast %132 : f32 to vector<8x128xf32>
    %541 = arith.mulf %540, %303 : vector<8x128xf32>
    %542 = arith.addf %539, %541 : vector<8x128xf32>
    %543 = vector.broadcast %133 : f32 to vector<8x128xf32>
    %544 = arith.mulf %543, %336 : vector<8x128xf32>
    %545 = arith.addf %542, %544 : vector<8x128xf32>
    %546 = vector.broadcast %134 : f32 to vector<8x128xf32>
    %547 = arith.mulf %546, %369 : vector<8x128xf32>
    %548 = arith.addf %545, %547 : vector<8x128xf32>
    %549 = vector.broadcast %135 : f32 to vector<8x128xf32>
    %550 = arith.mulf %549, %402 : vector<8x128xf32>
    %551 = arith.addf %548, %550 : vector<8x128xf32>
    %552 = vector.broadcast %136 : f32 to vector<8x128xf32>
    %553 = arith.mulf %552, %435 : vector<8x128xf32>
    %554 = arith.addf %551, %553 : vector<8x128xf32>
    %555 = vector.broadcast %137 : f32 to vector<8x128xf32>
    %556 = arith.mulf %555, %468 : vector<8x128xf32>
    %557 = arith.addf %554, %556 : vector<8x128xf32>
    %558 = vector.broadcast %138 : f32 to vector<8x128xf32>
    %559 = arith.mulf %558, %501 : vector<8x128xf32>
    %560 = arith.addf %557, %559 : vector<8x128xf32>
    %561 = vector.broadcast %139 : f32 to vector<8x128xf32>
    %562 = arith.mulf %561, %534 : vector<8x128xf32>
    %563 = arith.addf %560, %562 : vector<8x128xf32>
    %564 = vector.broadcast %140 : f32 to vector<8x128xf32>
    %565 = arith.addf %563, %564 : vector<8x128xf32>
    %566 = arith.index_cast %142 : i32 to index
    %c0_20 = arith.constant 0 : index
    %567 = vector.load %arg3[%566, %c0_20] : memref<8x128xf32, #tpu.memory_space<vmem>>, vector<8x128xf32>
    tpu.vector_store %arg3[%566, %c0_20], %565 {strides = array<i32>} : memref<8x128xf32, #tpu.memory_space<vmem>>, vector<8x128xf32>,
    %c1_i32 = arith.constant 1 : i32
    return
  }
  func.func @transform_0(%arg0: i32) -> i32 {
    %c0_i32 = arith.constant 0 : i32
    %c0_i32_0 = arith.constant 0 : i32
    return %c0_i32 : i32
  }
  func.func @transform_1(%arg0: i32) -> (i32, i32) {
    %c0_i32 = arith.constant 0 : i32
    %c0_i32_0 = arith.constant 0 : i32
    return %arg0, %c0_i32 : i32, i32
  }
  func.func @transform_2(%arg0: i32) -> (i32, i32) {
    %c0_i32 = arith.constant 0 : i32
    %c0_i32_0 = arith.constant 0 : i32
    return %arg0, %c0_i32 : i32, i32
  }
}

</mosaic_0001>

<bundles_post_ra>
// kernel: tpu_custom_call.1
= control target key start
LH: loop header
LB: loop body
LE: loop exit
PB: predicated region body
PF: predicated region fallthrough
CT: control target
= control target key end

     0   :  { %s1383_s0 = inlined_call_operand.hbm [shape: f32[141], index: 0, kind: input, shape index: {}]   ;;  %s1384_s1 = inlined_call_operand.hbm [shape: f32[8,128], index: 1, kind: input, shape index: {}]   ;;  %s1385_s2 = inlined_call_operand.hbm [shape: f32[8,128], index: 2, kind: output, shape index: {}]  }
   0x1   :  { %1386 = sst [smem:[#allocation24_spill]] %s1385_s2 }
   0x2   :  { %7 = vsyncpa [#allocation5], 0 }
   0x3   :  { %8 = vsyncpa [#allocation3], 0 }
   0x4   :  { %9 = vsyncpa [#allocation4], 0  ;;  %s792_s9 = smov [#allocation2]   ;;  %s793_s12 = smov [#allocation6]  }
   0x5   :  { %17 = dma.hbm_to_smem %s1383_s0, 32, %s792_s9, [#allocation5]  }
   0x6   :  { %s24_s13 = sshll.u32 %s793_s12, 4  ;;  %s25_s13 = int_to_ptr.vmem [resolvable:$true] %s24_s13 }
   0x7   :  { %s754_s14 = scalar_lea.vmem %s25_s13, 128  ;;  %p759_p1 = scmp.lt.s32.totalorder %s25_s13, %s25_s13 }
   0x8   :  { %p755_p0 = scmp.ne.s32.totalorder %s25_s13, %s754_s14  ;;  %p760_p2 = scmp.lt.s32.totalorder %s754_s14, %s754_s14 }
   0xa   :  { %p761_p3 = por %p760_p2, %p759_p1 }
   0xc   :  { %p762_p4 = pnand %p761_p3, %p755_p0 }
   0xe   :  { %765 = shalt.err (!%p762_p4)
}
   0xf   :  { %27 = dma.hbm_to_vmem [thread:$0]  %s1384_s1, 128, %s25_s13, [#allocation3]  }
  0x10   :  { %786 = dma.done.wait [#allocation5], 32  }
  0x11   :  { %787 = vsyncadd [#allocation5], 4294967264 }
  0x12   :  { %788 = dma.done.wait [#allocation3], 128  }
  0x13   :  { %789 = vsyncadd [#allocation3], 4294967168 }
  0x14   :  { %34 = sfence }
  0x15   :  { %s816_s0 = sld [smem:[#allocation2]]  ;;  %v890_v0 = vld [vmem:[#allocation6] sm:$0xff] }
  0x16   :  { %s818_s17 = sld [smem:[#allocation2 + $0x1]] }
  0x17   :  { %s820_s18 = sld [smem:[#allocation2 + $0x2]] }
  0x18   :  { %s822_s19 = sld [smem:[#allocation2 + $0x3]] }
  0x19   :  { %s824_s20 = sld [smem:[#allocation2 + $0x4]] }
  0x1a   :  { %s826_s21 = sld [smem:[#allocation2 + $0x5]] }
  0x1b   :  { %s828_s22 = sld [smem:[#allocation2 + $0x6]]  ;;  %v177_v1 = vstv %s816_s0 }
  0x1c   :  { %s830_s1 = sld [smem:[#allocation2 + $0x7]]  ;;  %v182_v2 = vstv %s818_s17  ;;  %v178_v3 = vmul.f32 %v177_v1, %v890_v0 }
  0x1d   :  { %s832_s23 = sld [smem:[#allocation2 + $0x8]]  ;;  %v183_v4 = vmul.f32 %v182_v2, %v890_v0  ;;  %v187_v7 = vstv %s820_s18 }
  0x1e   :  { %s834_s24 = sld [smem:[#allocation2 + $0x9]]  ;;  %v188_v10 = vmul.f32 %v187_v7, %v890_v0  ;;  %v192_v11 = vstv %s822_s19 }
  0x1f   :  { %s836_s25 = sld [smem:[#allocation2 + $0xa]]  ;;  %v193_v13 = vmul.f32 %v192_v11, %v890_v0  ;;  %v197_v14 = vstv %s824_s20 }
  0x20   :  { %s838_s26 = sld [smem:[#allocation2 + $0xb]]  ;;  %v198_v22 = vmul.f32 %v197_v14, %v890_v0  ;;  %v202_v23 = vstv %s826_s21 }
  0x21   :  { %s840_s27 = sld [smem:[#allocation2 + $0xc]]  ;;  %v207_v29 = vstv %s828_s22  ;;  %v203_v32 = vmul.f32 %v202_v23, %v890_v0 }
  0x22   :  { %s842_s28 = sld [smem:[#allocation2 + $0xd]]  ;;  %v212_v30 = vstv %s830_s1  ;;  %v208_v39 = vmul.f32 %v207_v29, %v890_v0 }
  0x23   :  { %s844_s29 = sld [smem:[#allocation2 + $0xe]]  ;;  %v213_v40 = vmul.f32 %v212_v30, %v890_v0  ;;  %v217_v41 = vstv %s832_s23 }
  0x24   :  { %s846_s30 = sld [smem:[#allocation2 + $0xf]]  ;;  %v222_v44 = vstv %s834_s24  ;;  %v218_v51 = vmul.f32 %v217_v41, %v890_v0 }
  0x25   :  { %s848_s3 = sld [smem:[#allocation2 + $0x10]]  ;;  %v179_v5 = vstv %s836_s25  ;;  %v223_v56 = vmul.f32 %v222_v44, %v890_v0 }
  0x26   :  { %s850_s4 = sld [smem:[#allocation2 + $0x11]]  ;;  %v184_v6 = vstv %s838_s26  ;;  %v180_v8 = vadd.f32 %v179_v5, %v178_v3 }
  0x27   :  { %s852_s5 = sld [smem:[#allocation2 + $0x12]]  ;;  %v185_v9 = vadd.f32 %v184_v6, %v183_v4  ;;  %v189_v12 = vstv %s840_s27 }
  0x28   :  { %s854_s6 = sld [smem:[#allocation2 + $0x13]]  ;;  %v926_v15 = vmax.f32 %v180_v8, 0.0  ;;  %v190_v17 = vadd.f32 %v189_v12, %v188_v10  ;;  %v194_v18 = vstv %s842_s28 }
  0x29   :  { %s856_s7 = sld [smem:[#allocation2 + $0x14]]  ;;  %v928_v16 = vmax.f32 %v185_v9, 0.0  ;;  %v195_v21 = vadd.f32 %v194_v18, %v193_v13  ;;  %v199_v25 = vstv %s844_s29 }
  0x2a   :  { %s858_s8 = sld [smem:[#allocation2 + $0x15]]  ;;  %v943_v24 = vmax.f32 %v190_v17, 0.0  ;;  %v200_v31 = vadd.f32 %v199_v25, %v198_v22  ;;  %v204_v36 = vstv %s846_s30 }
  0x2b   :  { %s860_s9 = sld [smem:[#allocation2 + $0x16]]  ;;  %v962_v35 = vmax.f32 %v195_v21, 0.0  ;;  %v209_v43 = vstv %s848_s3  ;;  %v205_v48 = vadd.f32 %v204_v36, %v203_v32 }
  0x2c   :  { %s862_s10 = sld [smem:[#allocation2 + $0x17]]  ;;  %v980_v47 = vmax.f32 %v200_v31, 0.0  ;;  %v214_v49 = vstv %s850_s4  ;;  %v210_v55 = vadd.f32 %v209_v43, %v208_v39 }
  0x2d   :  { %1387 = sst [smem:[#allocation11_spill]] %s852_s5  ;;  %v215_v59 = vadd.f32 %v214_v49, %v213_v40  ;;  %v1000_v63 = vmax.f32 %v205_v48, 0.0 }
  0x2e   :  { %1388 = sst [smem:[#allocation12_spill]] %s854_s6  ;;  %v1015_v9 = vmax.f32 %v210_v55, 0.0 }
  0x2f   :  { %s864_s11 = sld [smem:[#allocation2 + $0x18]]  ;;  %v227_v19 = vstv %s856_s7  ;;  %v1017_v10 = vmax.f32 %v215_v59, 0.0 }
  0x30   :  { %s866_s12 = sld [smem:[#allocation2 + $0x19]]  ;;  %v229_v20 = vstv %s858_s8  ;;  %v228_v26 = vmul.f32 %v227_v19, %v926_v15 }
  0x31   :  { %s868_s13 = sld [smem:[#allocation2 + $0x1a]]  ;;  %v230_v27 = vmul.f32 %v229_v20, %v928_v16  ;;  %v232_v28 = vstv %s860_s9 }
  0x32   :  { %s870_s14 = sld [smem:[#allocation2 + $0x1b]]  ;;  %v233_v38 = vmul.f32 %v232_v28, %v943_v24  ;;  %v235_v42 = vstv %s862_s10 }
  0x33   :  { %s872_s15 = sld [smem:[#allocation2 + $0x1c]]  ;;  %v231_v37 = vadd.f32 %v230_v27, %v228_v26  ;;  %v236_v53 = vmul.f32 %v235_v42, %v962_v35 }
  0x34   :  { %s874_s16 = sld [smem:[#allocation2 + $0x1d]] }
  0x35   :  { %1389 = sst [smem:[#allocation13_spill]] %s864_s11  ;;  %v234_v52 = vadd.f32 %v233_v38, %v231_v37 }
  0x36   :  { %1390 = sst [smem:[#allocation14_spill]] %s866_s12 }
  0x37   :  { %1391 = sst [smem:[#allocation15_spill]] %s868_s13  ;;  %v237_v0 = vadd.f32 %v236_v53, %v234_v52 }
  0x38   :  { %1392 = sst [smem:[#allocation16_spill]] %s870_s14 }
  0x39   :  { %1393 = sst [smem:[#allocation17_spill]] %s872_s15 }
  0x3a   :  { %1394 = sst [smem:[#allocation18_spill]] %s874_s16 }
  0x3b   :  { %s876_s2 = sld [smem:[#allocation2 + $0x1e]] }
  0x3c   :  { %s878_s6 = sld [smem:[#allocation2 + $0x1f]] }
  0x3d   :  { %s880_s5 = sld [smem:[#allocation2 + $0x20]] }
  0x3e   :  { %s882_s11 = sld [smem:[#allocation2 + $0x21]] }
  0x3f   :  { %s884_s12 = sld [smem:[#allocation2 + $0x22]] }
  0x40   :  { %s886_s13 = sld [smem:[#allocation2 + $0x23]] }
  0x41   :  { %s888_s14 = sld [smem:[#allocation2 + $0x24]]  ;;  %v259_v33 = vstv %s876_s2 }
  0x42   :  { %s894_s16 = sld [smem:[#allocation2 + $0x25]]  ;;  %v261_v34 = vstv %s878_s6  ;;  %v260_v45 = vmul.f32 %v259_v33, %v926_v15 }
  0x43   :  { %1395 = sst [smem:[#allocation19_spill]] %s880_s5  ;;  %v262_v46 = vmul.f32 %v261_v34, %v928_v16 }
  0x44   :  { %s896_s15 = sld [smem:[#allocation2 + $0x26]]  ;;  %v267_v3 = vstv %s882_s11 }
  0x45   :  { %1396 = sst [smem:[#allocation20_spill]] %s884_s12  ;;  %v263_v61 = vadd.f32 %v262_v46, %v260_v45  ;;  %v268_v12 = vmul.f32 %v267_v3, %v962_v35 }
  0x46   :  { %s898_s5 = sld [smem:[#allocation2 + $0x27]]  ;;  %v273_v33 = vstv %s886_s13 }
  0x47   :  { %s902_s12 = sld [smem:[#allocation2 + $0x28]]  ;;  %v274_v44 = vmul.f32 %v273_v33, %v1000_v63 }
  0x48   :  { %1397 = sst [smem:[#allocation21_spill]] %s894_s16 }
  0x49   :  { %s907_s0 = sld [smem:[#allocation2 + $0x29]] }
  0x4a   :  { %s909_s17 = sld [smem:[#allocation2 + $0x2a]]  ;;  %v282_v3 = vstv %s896_s15 }
  0x4b   :  { %s911_s16 = sld [smem:[#allocation2 + $0x2b]] }
  0x4c   :  { %1398 = sst [smem:[#allocation22_spill]] %s898_s5 }
  0x4d   :  { %s915_s5 = sld [smem:[#allocation2 + $0x2c]]  ;;  %v291_v57 = vstv %s902_s12 }
  0x4e   :  { %s918_s25 = sld [smem:[#allocation2 + $0x2d]]  ;;  %v292_v5 = vmul.f32 %v291_v57, %v926_v15 }
  0x4f   :  { %s920_s18 = sld [smem:[#allocation2 + $0x2e]]  ;;  %v293_v58 = vstv %s907_s0 }
  0x50   :  { %s924_s26 = sld [smem:[#allocation2 + $0x2f]]  ;;  %v294_v6 = vmul.f32 %v293_v58, %v928_v16  ;;  %v296_v8 = vstv %s909_s17 }
  0x51   :  { %s931_s19 = sld [smem:[#allocation2 + $0x30]]  ;;  %v297_v22 = vmul.f32 %v296_v8, %v943_v24  ;;  %v299_v25 = vstv %s911_s16 }
  0x52   :  { %s935_s27 = sld [smem:[#allocation2 + $0x31]]  ;;  %v295_v21 = vadd.f32 %v294_v6, %v292_v5  ;;  %v300_v38 = vmul.f32 %v299_v25, %v962_v35 }
  0x53   :  { %s941_s20 = sld [smem:[#allocation2 + $0x33]]  ;;  %v302_v39 = vstv %s915_s5 }
  0x54   :  { %s948_s28 = sld [smem:[#allocation2 + $0x34]]  ;;  %v298_v37 = vadd.f32 %v297_v22, %v295_v21  ;;  %v303_v53 = vmul.f32 %v302_v39, %v980_v47 }
  0x55   :  { %1399 = sst [smem:[#allocation23_spill]] %s920_s18 }
  0x56   :  { %s937_s18 = sld [smem:[#allocation2 + $0x32]]  ;;  %v301_v52 = vadd.f32 %v300_v38, %v298_v37 }
  0x57   :  { %s951_s7 = sld [smem:[#allocation2 + $0x35]] }
  0x58   :  { %s955_s21 = sld [smem:[#allocation2 + $0x36]]  ;;  %v304_v5 = vadd.f32 %v303_v53, %v301_v52 }
  0x59   :  { %s960_s29 = sld [smem:[#allocation2 + $0x37]]  ;;  %v325_v29 = vstv %s941_s20 }
  0x5a   :  { %s1400_s22 = sld [smem:[#allocation19_spill]]  ;;  %v326_v41 = vmul.f32 %v325_v29, %v928_v16  ;;  %v328_v42 = vstv %s948_s28  ;;  %v311_v29 = vstv %s924_s26 }
  0x5b   :  { %s966_s1 = sld [smem:[#allocation2 + $0x38]]  ;;  %v329_v55 = vmul.f32 %v328_v42, %v943_v24 }
  0x5c   :  { %s1401_s8 = sld [smem:[#allocation13_spill]]  ;;  %v323_v28 = vstv %s937_s18 }
  0x5d   :  { %s972_s2 = sld [smem:[#allocation2 + $0x39]]  ;;  %v324_v40 = vmul.f32 %v323_v28, %v926_v15  ;;  %v331_v57 = vstv %s951_s7 }
  0x5e   :  { %s978_s30 = sld [smem:[#allocation2 + $0x3a]]  ;;  %v332_v8 = vmul.f32 %v331_v57, %v962_v35 }
  0x5f   :  { %s1403_s6 = sld [smem:[#allocation11_spill]] }
  0x60   :  { %v264_v50 = vstv %s1400_s22  ;;  %s984_s23 = sld [smem:[#allocation2 + $0x3b]] }
  0x61   :  { %s1405_s3 = sld [smem:[#allocation12_spill]]  ;;  %v265_v62 = vmul.f32 %v264_v50, %v943_v24  ;;  %v276_v50 = vstv %s888_s14 }
  0x62   :  { %v238_v54 = vstv %s1401_s8  ;;  %s989_s24 = sld [smem:[#allocation2 + $0x3c]] }
  0x63   :  { %s1406_s9 = sld [smem:[#allocation14_spill]]  ;;  %v239_v2 = vmul.f32 %v238_v54, %v980_v47  ;;  %v266_v11 = vadd.f32 %v265_v62, %v263_v61  ;;  %v305_v54 = vstv %s918_s25  ;;  %v277_v62 = vmul.f32 %v276_v50, %v1015_v9 }
  0x64   :  { %1402 = sst [smem:[#allocation19_spill]] %s978_s30  ;;  %v306_v6 = vmul.f32 %v305_v54, %v1000_v63  ;;  %v314_v50 = vstv %s931_s19 }
  0x65   :  { %s994_s4 = sld [smem:[#allocation2 + $0x3d]]  ;;  %v219_v60 = vstv %s1403_s6  ;;  %v240_v19 = vadd.f32 %v239_v2, %v237_v0  ;;  %v269_v26 = vadd.f32 %v268_v12, %v266_v11  ;;  %v334_v12 = vstv %s955_s21 }
  0x66   :  { %1404 = sst [smem:[#allocation13_spill]] %s984_s23  ;;  %v220_v7 = vadd.f32 %v219_v60, %v218_v51 }
  0x67   :  { %s998_s10 = sld [smem:[#allocation2 + $0x3e]]  ;;  %v224_v1 = vstv %s1405_s3 }
  0x68   :  { %s1005_s22 = sld [smem:[#allocation2 + $0x3f]]  ;;  %v225_v13 = vadd.f32 %v224_v1, %v223_v56  ;;  %v1031_v23 = vmax.f32 %v220_v7, 0.0  ;;  %v355_v45 = vstv %s989_s24  ;;  %v327_v56 = vadd.f32 %v326_v41, %v324_v40 }
  0x69   :  { %s1407_s12 = sld [smem:[#allocation15_spill]]  ;;  %v241_v4 = vstv %s1406_s9  ;;  %v356_v58 = vmul.f32 %v355_v45, %v926_v15 }
  0x6a   :  { %s1408_s0 = sld [smem:[#allocation20_spill]]  ;;  %v242_v14 = vmul.f32 %v241_v4, %v1000_v63  ;;  %v1041_v30 = vmax.f32 %v225_v13, 0.0  ;;  %v330_v11 = vadd.f32 %v329_v55, %v327_v56  ;;  %v283_v22 = vmul.f32 %v282_v3, %v1031_v23 }
  0x6b   :  { %s1409_s8 = sld [smem:[#allocation16_spill]]  ;;  %v357_v46 = vstv %s994_s4 }
  0x6c   :  { %s1010_s6 = sld [smem:[#allocation2 + $0x40]]  ;;  %v243_v34 = vadd.f32 %v242_v14, %v240_v19  ;;  %v358_v59 = vmul.f32 %v357_v46, %v928_v16  ;;  %v333_v33 = vadd.f32 %v332_v8, %v330_v11  ;;  %v312_v46 = vmul.f32 %v311_v29, %v1017_v10 }
  0x6d   :  { %s1013_s23 = sld [smem:[#allocation2 + $0x41]]  ;;  %v360_v1 = vstv %s998_s10 }
  0x6e   :  { %s1020_s11 = sld [smem:[#allocation2 + $0x42]]  ;;  %v359_v13 = vadd.f32 %v358_v59, %v356_v58  ;;  %v361_v14 = vmul.f32 %v360_v1, %v943_v24  ;;  %v315_v59 = vmul.f32 %v314_v50, %v1031_v23 }
  0x6f   :  { %v244_v17 = vstv %s1407_s12  ;;  %s1025_s17 = sld [smem:[#allocation2 + $0x43]] }
  0x70   :  { %v270_v18 = vstv %s1408_s0  ;;  %s1410_s3 = sld [smem:[#allocation17_spill]]  ;;  %v245_v31 = vmul.f32 %v244_v17, %v1015_v9 }
  0x71   :  { %v247_v20 = vstv %s1409_s8  ;;  %s1029_s9 = sld [smem:[#allocation2 + $0x44]]  ;;  %v271_v27 = vmul.f32 %v270_v18, %v980_v47  ;;  %v363_v18 = vstv %s1005_s22 }
  0x72   :  { %s1034_s30 = sld [smem:[#allocation2 + $0x45]]  ;;  %v248_v32 = vmul.f32 %v247_v20, %v1017_v10  ;;  %v246_v60 = vadd.f32 %v245_v31, %v243_v34  ;;  %v335_v31 = vmul.f32 %v334_v12, %v980_v47  ;;  %v337_v34 = vstv %s960_s29 }
  0x73   :  { %s1039_s12 = sld [smem:[#allocation2 + $0x46]]  ;;  %v272_v43 = vadd.f32 %v271_v27, %v269_v26  ;;  %v307_v27 = vadd.f32 %v306_v6, %v304_v5  ;;  %v366_v38 = vstv %s1010_s6  ;;  %v369_v55 = vstv %s1013_s23 }
  0x74   :  { %s1046_s16 = sld [smem:[#allocation2 + $0x47]]  ;;  %v249_v21 = vadd.f32 %v248_v32, %v246_v60  ;;  %v362_v32 = vadd.f32 %v361_v14, %v359_v13  ;;  %v336_v52 = vadd.f32 %v335_v31, %v333_v33  ;;  %v317_v60 = vstv %s935_s27 }
  0x75   :  { %s1411_s0 = sld [smem:[#allocation18_spill]]  ;;  %v275_v61 = vadd.f32 %v274_v44, %v272_v43  ;;  %v370_v6 = vmul.f32 %v369_v55, %v1000_v63  ;;  %v372_v8 = vstv %s1020_s11  ;;  %v318_v13 = vmul.f32 %v317_v60, %v1041_v30 }
  0x76   :  { %v250_v36 = vstv %s1410_s3  ;;  %s1412_s18 = sld [smem:[#allocation21_spill]]  ;;  %v375_v29 = vstv %s1025_s17 }
  0x77   :  { %s1050_s20 = sld [smem:[#allocation2 + $0x48]]  ;;  %v251_v48 = vmul.f32 %v250_v36, %v1031_v23  ;;  %v278_v17 = vadd.f32 %v277_v62, %v275_v61  ;;  %v364_v36 = vmul.f32 %v363_v18, %v962_v35 }
  0x78   :  { %s1056_s13 = sld [smem:[#allocation2 + $0x49]] }
  0x79   :  { %s1061_s8 = sld [smem:[#allocation2 + $0x4a]]  ;;  %v387_v0 = vstv %s1039_s12  ;;  %v252_v41 = vadd.f32 %v251_v48, %v249_v21  ;;  %v340_v48 = vstv %s966_s1  ;;  %v365_v53 = vadd.f32 %v364_v36, %v362_v32 }
  0x7a   :  { %s1067_s5 = sld [smem:[#allocation2 + $0x4b]]  ;;  %v389_v4 = vstv %s1046_s16  ;;  %v388_v19 = vmul.f32 %v387_v0, %v926_v15  ;;  %v341_v1 = vmul.f32 %v340_v48, %v1015_v9 }
  0x7b   :  { %v253_v49 = vstv %s1411_s0  ;;  %s1072_s28 = sld [smem:[#allocation2 + $0x4c]]  ;;  %v390_v20 = vmul.f32 %v389_v4, %v928_v16  ;;  %v343_v4 = vstv %s972_s2 }
  0x7c   :  { %v279_v51 = vstv %s1412_s18  ;;  %s1413_s24 = sld [smem:[#allocation23_spill]]  ;;  %v254_v42 = vmul.f32 %v253_v49, %v1041_v30  ;;  %v367_v49 = vmul.f32 %v366_v38, %v980_v47 }
  0x7d   :  { %s1077_s14 = sld [smem:[#allocation2 + $0x4d]]  ;;  %v280_v2 = vmul.f32 %v279_v51, %v1017_v10  ;;  %v392_v26 = vstv %s1050_s20  ;;  %v391_v39 = vadd.f32 %v390_v20, %v388_v19  ;;  %v338_v51 = vmul.f32 %v337_v34, %v1000_v63 }
  0x7e   :  { %s1081_s25 = sld [smem:[#allocation2 + $0x4e]]  ;;  %v393_v40 = vmul.f32 %v392_v26, %v943_v24  ;;  %v395_v44 = vstv %s1056_s13  ;;  %v1139_v58 = vadd.f32 %v254_v42, %v252_v41  ;;  %v368_v5 = vadd.f32 %v367_v49, %v365_v53 }
  0x7f   :  { %s1087_s7 = sld [smem:[#allocation2 + $0x4f]]  ;;  %v281_v37 = vadd.f32 %v280_v2, %v278_v17  ;;  %v396_v57 = vmul.f32 %v395_v44, %v962_v35  ;;  %v398_v61 = vstv %s1061_s8  ;;  %v339_v0 = vadd.f32 %v338_v51, %v336_v52 }
  0x80   :  { %s1414_s4 = sld [smem:[#allocation22_spill]]  ;;  %v394_v56 = vadd.f32 %v393_v40, %v391_v39  ;;  %v399_v12 = vmul.f32 %v398_v61, %v980_v47  ;;  %v401_v14 = vstv %s1067_s5  ;;  %v344_v20 = vmul.f32 %v343_v4, %v1017_v10 }
  0x81   :  { %s1092_s3 = sld [smem:[#allocation2 + $0x50]]  ;;  %v284_v54 = vadd.f32 %v283_v22, %v281_v37  ;;  %v371_v26 = vadd.f32 %v370_v6, %v368_v5  ;;  %v402_v33 = vmul.f32 %v401_v14, %v1000_v63  ;;  %v404_v36 = vstv %s1072_s28 }
  0x82   :  { %v308_v7 = vstv %s1413_s24  ;;  %s1096_s15 = sld [smem:[#allocation2 + $0x51]]  ;;  %v397_v11 = vadd.f32 %v396_v57, %v394_v56  ;;  %v378_v51 = vstv %s1029_s9  ;;  %v405_v48 = vmul.f32 %v404_v36, %v1015_v9 }
  0x83   :  { %s1101_s10 = sld [smem:[#allocation2 + $0x52]]  ;;  %v309_v28 = vmul.f32 %v308_v7, %v1015_v9  ;;  %v381_v53 = vstv %s1034_s30  ;;  %v407_v49 = vstv %s1077_s14 }
  0x84   :  { %s1106_s21 = sld [smem:[#allocation2 + $0x53]]  ;;  %v400_v31 = vadd.f32 %v399_v12, %v397_v11  ;;  %v408_v4 = vmul.f32 %v407_v49, %v1017_v10  ;;  %v410_v5 = vstv %s1081_s25 }
  0x85   :  { %s1111_s22 = sld [smem:[#allocation2 + $0x54]]  ;;  %v310_v45 = vadd.f32 %v309_v28, %v307_v27  ;;  %v373_v27 = vmul.f32 %v372_v8, %v1015_v9 }
  0x86   :  { %v285_v25 = vstv %s1414_s4  ;;  %s1115_s12 = sld [smem:[#allocation2 + $0x55]]  ;;  %v403_v52 = vadd.f32 %v402_v33, %v400_v31 }
  0x87   :  { %s1119_s26 = sld [smem:[#allocation2 + $0x56]]  ;;  %v286_v43 = vmul.f32 %v285_v25, %v1041_v30  ;;  %v313_v62 = vadd.f32 %v312_v46, %v310_v45  ;;  %v419_v2 = vstv %s1092_s3  ;;  %v342_v25 = vadd.f32 %v341_v1, %v339_v0 }
  0x88   :  { %s1124_s29 = sld [smem:[#allocation2 + $0x57]]  ;;  %v421_v3 = vstv %s1096_s15  ;;  %v420_v17 = vmul.f32 %v419_v2, %v926_v15  ;;  %v374_v44 = vadd.f32 %v373_v27, %v371_v26  ;;  %v376_v45 = vmul.f32 %v375_v29, %v1017_v10 }
  0x89   :  { %s1129_s6 = sld [smem:[#allocation2 + $0x58]]  ;;  %v1155_v7 = vadd.f32 %v286_v43, %v284_v54  ;;  %v422_v18 = vmul.f32 %v421_v3, %v928_v16  ;;  %v316_v19 = vadd.f32 %v315_v59, %v313_v62  ;;  %v424_v22 = vstv %s1101_s10 }
  0x8a   :  { %s1133_s16 = sld [smem:[#allocation2 + $0x59]]  ;;  %v425_v38 = vmul.f32 %v424_v22, %v943_v24  ;;  %v427_v40 = vstv %s1106_s21  ;;  %v345_v43 = vadd.f32 %v344_v20, %v342_v25  ;;  %v377_v62 = vadd.f32 %v376_v45, %v374_v44 }
  0x8b   :  { %s1137_s19 = sld [smem:[#allocation2 + $0x5a]]  ;;  %v423_v37 = vadd.f32 %v422_v18, %v420_v17  ;;  %v1196_v50 = vadd.f32 %v318_v13, %v316_v19  ;;  %v428_v55 = vmul.f32 %v427_v40, %v962_v35  ;;  %v430_v57 = vstv %s1111_s22 }
  0x8c   :  { %s1144_s1 = sld [smem:[#allocation2 + $0x5b]]  ;;  %v379_v1 = vmul.f32 %v378_v51, %v1031_v23  ;;  %v382_v3 = vmul.f32 %v381_v53, %v1041_v30  ;;  %v406_v0 = vadd.f32 %v405_v48, %v403_v52  ;;  %v431_v8 = vmul.f32 %v430_v57, %v980_v47 }
  0x8d   :  { %s1149_s23 = sld [smem:[#allocation2 + $0x5c]]  ;;  %v426_v54 = vadd.f32 %v425_v38, %v423_v37  ;;  %v433_v11 = vstv %s1115_s12  ;;  %v411_v25 = vmul.f32 %v410_v5, %v1031_v23  ;;  %v436_v36 = vstv %s1119_s26 }
  0x8e   :  { %s1415_s0 = sld [smem:[#allocation19_spill]]  ;;  %v380_v19 = vadd.f32 %v379_v1, %v377_v62  ;;  %v434_v26 = vmul.f32 %v433_v11, %v1000_v63  ;;  %v413_v40 = vstv %s1087_s7  ;;  %v439_v44 = vstv %s1124_s29 }
  0x8f   :  { %s1153_s18 = sld [smem:[#allocation2 + $0x5d]]  ;;  %v429_v6 = vadd.f32 %v428_v55, %v426_v54  ;;  %v442_v45 = vstv %s1129_s6  ;;  %v437_v52 = vmul.f32 %v436_v36, %v1015_v9  ;;  %v414_v54 = vmul.f32 %v413_v40, %v1041_v30 }
  0x90   :  { %s1159_s27 = sld [smem:[#allocation2 + $0x5e]]  ;;  %v440_v57 = vmul.f32 %v439_v44, %v1017_v10 }
  0x91   :  { %s1165_s2 = sld [smem:[#allocation2 + $0x5f]]  ;;  %v451_v28 = vstv %s1137_s19  ;;  %v432_v29 = vadd.f32 %v431_v8, %v429_v6 }
  0x92   :  { %s1170_s11 = sld [smem:[#allocation2 + $0x60]]  ;;  %v453_v34 = vstv %s1144_s1  ;;  %v452_v41 = vmul.f32 %v451_v28, %v926_v15 }
  0x93   :  { %s1416_s20 = sld [smem:[#allocation13_spill]]  ;;  %v454_v42 = vmul.f32 %v453_v34, %v928_v16  ;;  %v456_v46 = vstv %s1149_s23  ;;  %v435_v51 = vadd.f32 %v434_v26, %v432_v29 }
  0x94   :  { %v346_v21 = vstv %s1415_s0  ;;  %s1174_s13 = sld [smem:[#allocation2 + $0x61]]  ;;  %v457_v60 = vmul.f32 %v456_v46, %v943_v24 }
  0x95   :  { %s1179_s8 = sld [smem:[#allocation2 + $0x62]]  ;;  %v347_v32 = vmul.f32 %v346_v21, %v1031_v23  ;;  %v455_v59 = vadd.f32 %v454_v42, %v452_v41  ;;  %v459_v2 = vstv %s1153_s18 }
  0x96   :  { %s1184_s5 = sld [smem:[#allocation2 + $0x63]]  ;;  %v460_v14 = vmul.f32 %v459_v2, %v962_v35  ;;  %v462_v20 = vstv %s1159_s27 }
  0x97   :  { %s1190_s17 = sld [smem:[#allocation2 + $0x64]]  ;;  %v348_v61 = vadd.f32 %v347_v32, %v345_v43  ;;  %v458_v13 = vadd.f32 %v457_v60, %v455_v59  ;;  %v409_v32 = vadd.f32 %v408_v4, %v406_v0  ;;  %v463_v38 = vmul.f32 %v462_v20, %v980_v47 }
  0x98   :  { %s1194_s28 = sld [smem:[#allocation2 + $0x65]]  ;;  %v465_v41 = vstv %s1165_s2  ;;  %v1256_v43 = vadd.f32 %v382_v3, %v380_v19  ;;  %v443_v59 = vmul.f32 %v442_v45, %v1031_v23  ;;  %v468_v60 = vstv %s1170_s11 }
  0x99   :  { %v349_v39 = vstv %s1416_s20  ;;  %s1200_s24 = sld [smem:[#allocation2 + $0x66]]  ;;  %v461_v37 = vadd.f32 %v460_v14, %v458_v13  ;;  %v412_v49 = vadd.f32 %v411_v25, %v409_v32  ;;  %v438_v0 = vadd.f32 %v437_v52, %v435_v51 }
  0x9a   :  { %s1205_s4 = sld [smem:[#allocation2 + $0x67]]  ;;  %v350_v56 = vmul.f32 %v349_v39, %v1041_v30  ;;  %v469_v11 = vmul.f32 %v468_v60, %v1015_v9  ;;  %v471_v13 = vstv %s1174_s13 }
  0x9b   :  { %s1210_s9 = sld [smem:[#allocation2 + $0x68]]  ;;  %v464_v55 = vadd.f32 %v463_v38, %v461_v37 }
  0x9c   :  { %s1214_s30 = sld [smem:[#allocation2 + $0x69]]  ;;  %v1250_v39 = vadd.f32 %v350_v56, %v348_v61  ;;  %v466_v56 = vmul.f32 %v465_v41, %v1000_v63  ;;  %v477_v51 = vstv %s1184_s5 }
  0x9d   :  { %s1219_s14 = sld [smem:[#allocation2 + $0x6a]]  ;;  %v483_v12 = vstv %s1190_s17 }
  0x9e   :  { %s1224_s3 = sld [smem:[#allocation2 + $0x6b]]  ;;  %v484_v17 = vmul.f32 %v483_v12, %v926_v15  ;;  %v485_v18 = vstv %s1194_s28  ;;  %v467_v8 = vadd.f32 %v466_v56, %v464_v55 }
  0x9f   :  { %s1229_s15 = sld [smem:[#allocation2 + $0x6c]]  ;;  %v486_v21 = vmul.f32 %v485_v18, %v928_v16  ;;  %v488_v22 = vstv %s1200_s24 }
  0xa0   :  { %s1234_s25 = sld [smem:[#allocation2 + $0x6d]]  ;;  %v489_v27 = vmul.f32 %v488_v22, %v943_v24  ;;  %v491_v28 = vstv %s1205_s4 }
  0xa1   :  { %s1240_s10 = sld [smem:[#allocation2 + $0x6e]]  ;;  %v487_v31 = vadd.f32 %v486_v21, %v484_v17  ;;  %v492_v33 = vmul.f32 %v491_v28, %v962_v35  ;;  %v494_v34 = vstv %s1210_s9  ;;  %v472_v28 = vmul.f32 %v471_v13, %v1017_v10 }
  0xa2   :  { %s1244_s21 = sld [smem:[#allocation2 + $0x6f]]  ;;  %v495_v46 = vmul.f32 %v494_v34, %v980_v47  ;;  %v497_v53 = vstv %s1214_s30 }
  0xa3   :  { %s1248_s22 = sld [smem:[#allocation2 + $0x70]]  ;;  %v490_v42 = vadd.f32 %v489_v27, %v487_v31  ;;  %v498_v1 = vmul.f32 %v497_v53, %v1000_v63  ;;  %v500_v4 = vstv %s1219_s14  ;;  %v470_v27 = vadd.f32 %v469_v11, %v467_v8 }
  0xa4   :  { %s1254_s12 = sld [smem:[#allocation2 + $0x71]]  ;;  %v501_v20 = vmul.f32 %v500_v4, %v1015_v9  ;;  %v503_v22 = vstv %s1224_s3 }
  0xa5   :  { %s1261_s26 = sld [smem:[#allocation2 + $0x72]]  ;;  %v493_v48 = vadd.f32 %v492_v33, %v490_v42  ;;  %v474_v33 = vstv %s1179_s8  ;;  %v504_v36 = vmul.f32 %v503_v22, %v1017_v10  ;;  %v506_v37 = vstv %s1229_s15 }
  0xa6   :  { %s1265_s7 = sld [smem:[#allocation2 + $0x73]]  ;;  %v473_v45 = vadd.f32 %v472_v28, %v470_v27  ;;  %v509_v60 = vstv %s1234_s25 }
  0xa7   :  { %s1269_s29 = sld [smem:[#allocation2 + $0x74]]  ;;  %v515_v61 = vstv %s1240_s10  ;;  %v496_v62 = vadd.f32 %v495_v46, %v493_v48  ;;  %v475_v46 = vmul.f32 %v474_v33, %v1031_v23  ;;  %v507_v48 = vmul.f32 %v506_v37, %v1031_v23  ;;  %s794_s10 = smov [#allocation7]  }
  0xa8   :  { %s1275_s6 = sld [smem:[#allocation2 + $0x75]]  ;;  %v516_v2 = vmul.f32 %v515_v61, %v926_v15  ;;  %v517_v3 = vstv %s1244_s21  ;;  %s585_s21 = sshll.u32 %s794_s10, 4  ;;  %s586_s21 = int_to_ptr.vmem [resolvable:$true] %s585_s21 }
  0xa9   :  { %s1280_s19 = sld [smem:[#allocation2 + $0x76]]  ;;  %v518_v5 = vmul.f32 %v517_v3, %v928_v16  ;;  %v520_v6 = vstv %s1248_s22  ;;  %v445_v16 = vstv %s1133_s16  ;;  %v499_v19 = vadd.f32 %v498_v1, %v496_v62  ;;  %s766_s22 = scalar_lea.vmem %s586_s21, 128 }
  0xaa   :  { %s1285_s1 = sld [smem:[#allocation2 + $0x77]]  ;;  %v521_v12 = vmul.f32 %v520_v6, %v943_v24  ;;  %v523_v15 = vstv %s1254_s12  ;;  %v441_v24 = vadd.f32 %v440_v57, %v438_v0  ;;  %v446_v31 = vmul.f32 %v445_v16, %v1041_v30  ;;  %p767_p5 = scmp.ne.s32.totalorder %s586_s21, %s766_s22 }
  0xab   :  { %s1290_s23 = sld [smem:[#allocation2 + $0x78]]  ;;  %v519_v14 = vadd.f32 %v518_v5, %v516_v2  ;;  %v524_v17 = vmul.f32 %v523_v15, %v962_v35  ;;  %v526_v18 = vstv %s1261_s26  ;;  %v415_v35 = vadd.f32 %v414_v54, %v412_v49  ;;  %p771_p6 = scmp.lt.s32.totalorder %s586_s21, %s586_s21 }
  0xac   :  { %s1295_s0 = sld [smem:[#allocation2 + $0x79]]  ;;  %v529_v21 = vstv %s1265_s7  ;;  %v527_v26 = vmul.f32 %v526_v18, %v980_v47  ;;  %v502_v47 = vadd.f32 %v501_v20, %v499_v19  ;;  %v444_v41 = vadd.f32 %v443_v59, %v441_v24  ;;  %p772_p7 = scmp.lt.s32.totalorder %s766_s22, %s766_s22 }
  0xad   :  { %s1300_s18 = sld [smem:[#allocation2 + $0x7a]]  ;;  %v522_v25 = vadd.f32 %v521_v12, %v519_v14  ;;  %v532_v29 = vstv %s1269_s29  ;;  %v530_v32 = vmul.f32 %v529_v21, %v1000_v63  ;;  %v476_v1 = vadd.f32 %v475_v46, %v473_v45 }
  0xae   :  { %s1304_s27 = sld [smem:[#allocation2 + $0x7b]]  ;;  %v535_v38 = vstv %s1275_s6  ;;  %v533_v44 = vmul.f32 %v532_v29, %v1015_v9  ;;  %v505_v55 = vadd.f32 %v504_v36, %v502_v47  ;;  %v478_v2 = vmul.f32 %v477_v51, %v1041_v30  ;;  %p773_p8 = por %p772_p7, %p771_p6 }
  0xaf   :  { %s1308_s16 = sld [smem:[#allocation2 + $0x7c]]  ;;  %v525_v34 = vadd.f32 %v524_v17, %v522_v25  ;;  %v536_v49 = vmul.f32 %v535_v38, %v1017_v10  ;;  %v538_v56 = vstv %s1280_s19  ;;  %v510_v6 = vmul.f32 %v509_v60, %v1041_v30 }
  0xb0   :  { %s1313_s2 = sld [smem:[#allocation2 + $0x7d]]  ;;  %v539_v0 = vmul.f32 %v538_v56, %v1031_v23  ;;  %v479_v15 = vadd.f32 %v478_v2, %v476_v1  ;;  %p774_p9 = pnand %p773_p8, %p767_p5 }
  0xb1   :  { %s1318_s11 = sld [smem:[#allocation2 + $0x7e]]  ;;  %v256_v40 = vstv %s1290_s23  ;;  %v528_v42 = vadd.f32 %v527_v26, %v525_v34 }
  0xb2   :  { %s1322_s20 = sld [smem:[#allocation2 + $0x7f]]  ;;  %v288_v63 = vstv %s1295_s0  ;;  %v257_v9 = vadd.f32 %v256_v40, %v1139_v58 }
  0xb3   :  { %s1327_s13 = sld [smem:[#allocation2 + $0x80]]  ;;  %v320_v52 = vstv %s1300_s18  ;;  %v531_v53 = vadd.f32 %v530_v32, %v528_v42  ;;  %v289_v57 = vadd.f32 %v288_v63, %v1155_v7  ;;  %v541_v7 = vstv %s1285_s1 }
  0xb4   :  { %s1332_s8 = sld [smem:[#allocation2 + $0x81]]  ;;  %v352_v54 = vstv %s1304_s27  ;;  %v321_v62 = vadd.f32 %v320_v52, %v1196_v50  ;;  %v258_v4 = vmax.f32 %v257_v9, 0.0  ;;  %v508_v50 = vadd.f32 %v507_v48, %v505_v55 }
  0xb5   :  { %s1337_s17 = sld [smem:[#allocation2 + $0x82]]  ;;  %v384_v59 = vstv %s1308_s16  ;;  %v534_v61 = vadd.f32 %v533_v44, %v531_v53  ;;  %v353_v58 = vadd.f32 %v352_v54, %v1250_v39  ;;  %v290_v8 = vmax.f32 %v289_v57, 0.0 }
  0xb6   :  { %s1342_s5 = sld [smem:[#allocation2 + $0x83]]  ;;  %v416_v10 = vstv %s1313_s2  ;;  %v385_v5 = vadd.f32 %v384_v59, %v1256_v43  ;;  %v447_v39 = vadd.f32 %v446_v31, %v444_v41  ;;  %v322_v23 = vmax.f32 %v321_v62, 0.0 }
  0xb7   :  { %s1347_s28 = sld [smem:[#allocation2 + $0x84]]  ;;  %v537_v3 = vadd.f32 %v536_v49, %v534_v61  ;;  %v417_v11 = vadd.f32 %v416_v10, %v415_v35  ;;  %v448_v12 = vstv %s1318_s11  ;;  %v542_v13 = vmul.f32 %v541_v7, %v1041_v30 }
  0xb8   :  { %s1352_s24 = sld [smem:[#allocation2 + $0x85]]  ;;  %v354_v43 = vmax.f32 %v353_v58, 0.0  ;;  %v480_v14 = vstv %s1322_s20  ;;  %v386_v16 = vmax.f32 %v385_v5, 0.0  ;;  %v511_v19 = vadd.f32 %v510_v6, %v508_v50 }
  0xb9   :  { %s1356_s4 = sld [smem:[#allocation2 + $0x86]]  ;;  %v540_v17 = vadd.f32 %v539_v0, %v537_v3  ;;  %v418_v24 = vmax.f32 %v417_v11, 0.0  ;;  %v449_v22 = vadd.f32 %v448_v12, %v447_v39  ;;  %v481_v26 = vadd.f32 %v480_v14, %v479_v15 }
  0xba   :  { %s1358_s9 = sld [smem:[#allocation2 + $0x87]]  ;;  %v512_v35 = vstv %s1327_s13  ;;  %v544_v32 = vstv %s1332_s8 }
  0xbb   :  { %s1362_s30 = sld [smem:[#allocation2 + $0x88]]  ;;  %v547_v18 = vstv %s1337_s17  ;;  %v543_v29 = vadd.f32 %v542_v13, %v540_v17  ;;  %v450_v36 = vmax.f32 %v449_v22, 0.0  ;;  %v513_v37 = vadd.f32 %v512_v35, %v511_v19 }
  0xbc   :  { %s1366_s14 = sld [smem:[#allocation2 + $0x89]]  ;;  %v548_v20 = vmul.f32 %v547_v18, %v258_v4  ;;  %v549_v21 = vstv %s1342_s5  ;;  %v482_v42 = vmax.f32 %v481_v26, 0.0 }
  0xbd   :  { %v550_v30 = vmul.f32 %v549_v21, %v290_v8  ;;  %v552_v25 = vstv %s1347_s28  ;;  %s1370_s3 = sld [smem:[#allocation2 + $0x8a]]  ;;  %v545_v44 = vadd.f32 %v544_v32, %v543_v29  ;;  %v514_v51 = vmax.f32 %v513_v37, 0.0 }
  0xbe   :  { %v553_v27 = vmul.f32 %v552_v25, %v322_v23  ;;  %v555_v28 = vstv %s1352_s24  ;;  %s733_s15 = sld [smem:[#allocation2 + $0x8b]] }
  0xbf   :  { %v551_v31 = vadd.f32 %v550_v30, %v548_v20  ;;  %v556_v33 = vmul.f32 %v555_v28, %v354_v43  ;;  %v558_v34 = vstv %s1356_s4  ;;  %s734_s25 = sld [smem:[#allocation2 + $0x8c]]  ;;  %v546_v49 = vmax.f32 %v545_v44, 0.0 }
  0xc0   :  { %v561_v47 = vstv %s1358_s9  ;;  %v559_v40 = vmul.f32 %v558_v34, %v386_v16 }
  0xc1   :  { %v554_v38 = vadd.f32 %v553_v27, %v551_v31  ;;  %v564_v41 = vstv %s1362_s30  ;;  %v562_v45 = vmul.f32 %v561_v47, %v418_v24 }
  0xc2   :  { %v567_v46 = vstv %s1366_s14  ;;  %v565_v48 = vmul.f32 %v564_v41, %v450_v36 }
  0xc3   :  { %v557_v63 = vadd.f32 %v556_v33, %v554_v38  ;;  %v570_v53 = vstv %s1370_s3  ;;  %v568_v54 = vmul.f32 %v567_v46, %v482_v42 }
  0xc4   :  { %v573_v55 = vstv %s733_s15  ;;  %v571_v57 = vmul.f32 %v570_v53, %v514_v51 }
  0xc5   :  { %v560_v52 = vadd.f32 %v559_v40, %v557_v63  ;;  %v574_v60 = vmul.f32 %v573_v55, %v546_v49  ;;  %v576_v62 = vstv %s734_s25 }
  0xc7   :  { %v563_v9 = vadd.f32 %v562_v45, %v560_v52 }
  0xc9   :  { %v566_v56 = vadd.f32 %v565_v48, %v563_v9 }
  0xcb   :  { %v569_v59 = vadd.f32 %v568_v54, %v566_v56 }
  0xcd   :  { %v572_v61 = vadd.f32 %v571_v57, %v569_v59 }
  0xcf   :  { %v575_v10 = vadd.f32 %v574_v60, %v572_v61 }
  0xd1   :  { %v577_v1 = vadd.f32 %v576_v62, %v575_v10 }
  0xd3   :  { %578 = vst [vmem:[#allocation7] sm:$0xff] %v577_v1 }
  0xd4   :  { %777 = shalt.err (!%p774_p9)
}
  0xd5   :  { %s1417_s7 = sld [smem:[#allocation24_spill]] }
  0xdb   :  { %588 = dma.vmem_to_hbm [thread:$0]  %s586_s21, 128, %s1417_s7, [#allocation4]  }
  0xdc   :  { %790 = dma.done.wait [#allocation4], 128  }
  0xdd   :  { %791 = vsyncadd [#allocation4], 4294967168 }
  0xde   :  { %592 = vsyncpa [#allocation3], 1 }
  0xdf   :  { %593 = vsyncpa [#allocation4], 1 }
  0xe0   :  { %594 = vsyncpa [#allocation5], 1 }

</bundles_post_ra>
